<compile_context>
chip_gen: v7x
topology: tpu7x:2x2x1
jax: 0.10.0
libtpu: 0.0.40
codegen_flags: <defaults>
</compile_context>

<pallas_src>
import functools
import numpy as np
import jax
import jax.numpy as jnp
from jax import lax
from jax.experimental import pallas as pl
from jax.experimental.pallas import tpu as pltpu


INPUT_FEATS = 55 * 6                         # 330, fixed by the module
FPAD = ((INPUT_FEATS + 127) // 128) * 128    # 384: lane-dense padded output width


# ------------------------------- in-kernel helpers -------------------------------

def _layer_norm(x, w, b, eps=1e-5):
    mu = jnp.mean(x, axis=-1, keepdims=True)
    xc = x - mu
    var = jnp.mean(xc * xc, axis=-1, keepdims=True)
    return xc * lax.rsqrt(var + eps) * w + b


def _gelu_tanh(x):
    # TODO(synk): PyTorch F.gelu defaults to the exact erf formulation; the tanh
    # approximation is used (documented ~1e-3-level systematic difference) since erf is
    # not guaranteed to lower in Mosaic.
    c = np.float32(np.sqrt(2.0 / np.pi))
    return 0.5 * x * (1.0 + jnp.tanh(c * (x + np.float32(0.044715) * x * x * x)))


def _linear(x, w, b=None):
    # x: (n, d_in) f32; w: (d_out, d_in) PyTorch layout (f32 or bf16); b: (1, d_out) f32.
    y = lax.dot_general(x.astype(w.dtype), w, (((1,), (1,)), ((), ())),
                        preferred_element_type=jnp.float32)
    if b is not None:
        y = y + b
    return y


# ------------------------------------ kernel ------------------------------------

def decoder_kernel(num_heads,
                   pe_ref, mem_ref,
                   wqkv_s_ref, wo_s_ref, wv_c_ref, wo_c_ref, w1_ref, w2_ref,
                   small_ref, bff1_ref, wf_ref, bf_ref,
                   out_ref, x_ref):
    layer = pl.program_id(1)
    n_layers = pl.num_programs(1)
    BB, T, _ = out_ref.shape          # (b_block, T, FPAD)
    N, D = x_ref.shape                # N = b_block * T
    H = num_heads
    dh = D // H
    scale = np.float32(1.0 / np.sqrt(dh))

    # layer 0 of every batch block: broadcast the positional-encoding query over batch
    @pl.when(layer == 0)
    def _():
        x_ref[...] = jnp.tile(pe_ref[...], (BB, 1))          # (BB*T, D)

    # per-layer parameters (leading size-1 layer dim from BlockSpec)
    wqkv = wqkv_s_ref[0]              # (3D, D)
    wo_s = wo_s_ref[0]                # (D, D)
    wv_c = wv_c_ref[0]                # (D, D)   cross-attention V rows only
    wo_c = wo_c_ref[0]                # (D, D)
    w1 = w1_ref[0]                    # (F, D)
    w2 = w2_ref[0]                    # (D, F)
    sp = small_ref[0]                 # (13, D)  packed small per-layer params
    bq, bk, bv = sp[0:1], sp[1:2], sp[2:3]
    bo_s = sp[3:4]
    ln1w, ln1b = sp[4:5], sp[5:6]
    bv_c, bo_c = sp[6:7], sp[7:8]
    ln2w, ln2b = sp[8:9], sp[9:10]
    b2 = sp[10:11]
    ln3w, ln3b = sp[11:12], sp[12:13]
    b1 = bff1_ref[0]                  # (1, F)

    x2 = x_ref[...]                   # (N, D) running hidden state (f32)

    # ---------------- self attention, batch fused over all B*T rows ----------------
    qkv = _linear(x2, wqkv)                                   # (N, 3D), one MXU pass
    q3 = (qkv[:, 0:D] + bq).reshape(BB, T, D)
    k3 = (qkv[:, D:2 * D] + bk).reshape(BB, T, D)
    v3 = (qkv[:, 2 * D:3 * D] + bv).reshape(BB, T, D)

    attn = jnp.zeros((N, D), jnp.float32)
    for h in range(H):                                        # small static head loop
        sl = slice(h * dh, (h + 1) * dh)
        qh, kh, vh = q3[:, :, sl], k3[:, :, sl], v3[:, :, sl]
        s = jnp.einsum('btd,bsd->bts', qh, kh,
                       preferred_element_type=jnp.float32) * scale
        s = s - jnp.max(s, axis=-1, keepdims=True)
        p = jnp.exp(s)
        p = p * pl.reciprocal(jnp.sum(p, axis=-1, keepdims=True), approx=True)
        oh = jnp.einsum('bts,bsd->btd', p, vh,
                        preferred_element_type=jnp.float32)
        # concat(heads) @ Wo.T == sum_h oh @ Wo[:, h_slice].T  (avoids concatenate)
        attn = attn + _linear(oh.reshape(N, dh), wo_s[:, sl])
    attn = attn + bo_s
    x2 = _layer_norm(x2 + attn, ln1w, ln1b)

    # ---- cross attention: memory length is 1 -> softmax over the single key is exactly
    #      1, so the attention output equals V(memory) @ Wo for every query row ----
    memv = mem_ref[:, 0, :]                                   # (BB, D)
    vc = _linear(memv, wv_c, bv_c)                            # (BB, D), once per layer
    cross = _linear(vc, wo_c, bo_c)                           # (BB, D)
    x2 = (x2.reshape(BB, T, D) + cross[:, None, :]).reshape(N, D)
    x2 = _layer_norm(x2, ln2w, ln2b)

    # ------------------------------- feed-forward ----------------------------------
    hid = _gelu_tanh(_linear(x2, w1, b1))
    ffo = _linear(hid, w2, b2)
    x2 = _layer_norm(x2 + ffo, ln3w, ln3b)

    x_ref[...] = x2

    # ------------------ final projection: one fused matmul, last layer --------------
    @pl.when(layer == n_layers - 1)
    def _():
        pose = _linear(x2, wf_ref[...], bf_ref[...])          # (N, FPAD) lane-dense
        out_ref[...] = pose.reshape(BB, T, -1)


# ------------------------------------- glue --------------------------------------

def sinusoidal_pe(max_len, d_model):
    position = np.arange(max_len, dtype=np.float32)[:, None]
    div_term = np.exp(np.arange(0, d_model, 2, dtype=np.float32)
                      * (-np.log(10000.0) / d_model))
    pe = np.zeros((max_len, d_model), np.float32)
    pe[:, 0::2] = np.sin(position * div_term)
    pe[:, 1::2] = np.cos(position * div_term)
    return jnp.asarray(pe)


def init_params(key, *, latent_dim, ff_size, num_layers, input_feats, max_len):
    D, F, L = latent_dim, ff_size, num_layers
    keys = iter(jax.random.split(key, 64))

    def nrm(shape, scale=0.1):
        return scale * jax.random.normal(next(keys), shape, jnp.float32)

    return {
        "pe": sinusoidal_pe(max_len, D),
        "wqkv_self": nrm((L, 3 * D, D)), "bqkv_self": nrm((L, 1, 3 * D)),
        "wo_self": nrm((L, D, D)), "bo_self": nrm((L, 1, D)),
        "ln1_w": 1.0 + nrm((L, 1, D)), "ln1_b": nrm((L, 1, D)),
        "wqkv_cross": nrm((L, 3 * D, D)), "bqkv_cross": nrm((L, 1, 3 * D)),
        "wo_cross": nrm((L, D, D)), "bo_cross": nrm((L, 1, D)),
        "ln2_w": 1.0 + nrm((L, 1, D)), "ln2_b": nrm((L, 1, D)),
        "w_ff1": nrm((L, F, D)), "b_ff1": nrm((L, 1, F)),
        "w_ff2": nrm((L, D, F)), "b_ff2": nrm((L, 1, D)),
        "ln3_w": 1.0 + nrm((L, 1, D)), "ln3_b": nrm((L, 1, D)),
        "w_final": nrm((input_feats, D)), "b_final": nrm((1, input_feats)),
    }


def pack_small_params(params, D):
    """Pack the 13 D-wide per-layer vectors (biases + LN affine) into one (L, 13, D) array."""
    bqkv = params["bqkv_self"]                 # (L, 1, 3D)
    bqkv_c = params["bqkv_cross"]              # (L, 1, 3D)
    rows = [
        bqkv[:, 0, 0:D], bqkv[:, 0, D:2 * D], bqkv[:, 0, 2 * D:3 * D],   # bq, bk, bv (self)
        params["bo_self"][:, 0, :],
        params["ln1_w"][:, 0, :], params["ln1_b"][:, 0, :],
        bqkv_c[:, 0, 2 * D:3 * D],                                       # bv (cross V only)
        params["bo_cross"][:, 0, :],
        params["ln2_w"][:, 0, :], params["ln2_b"][:, 0, :],
        params["b_ff2"][:, 0, :],
        params["ln3_w"][:, 0, :], params["ln3_b"][:, 0, :],
    ]
    return jnp.stack(rows, axis=1).astype(jnp.float32)                   # (L, 13, D)


def motion_decoder_forward(inp, params, *, seq_len, num_heads,
                           b_block=None, weights_dtype=jnp.float32):
    B, D = inp.shape
    T = seq_len
    L = params["wqkv_self"].shape[0]
    assert D % num_heads == 0

    # Batch-block grid axis ("parallel") — on v7x this shards batch blocks across the two
    # TensorCores and bounds the per-core resident working set under the 64 MiB VMEM.
    if b_block is None:
        b_block = B if (B < 16 or B % 2 != 0) else B // 2
    assert B % b_block == 0
    nb = B // b_block

    cast = lambda a: a.astype(weights_dtype)

    # query = pe[:T] passed once as (T, D); broadcast over batch inside the kernel.
    pe_q = params["pe"][:T].astype(jnp.float32)
    # memory length is exactly 1 (input.view(1, B, -1)); the kernel's cross-attention
    # shortcut (softmax over a single key == 1) relies on this.
    memory = inp.reshape(B, 1, D).astype(jnp.float32)

    wqkv_s = cast(params["wqkv_self"])                      # (L, 3D, D)
    wo_s = cast(params["wo_self"])                          # (L, D, D)
    wv_c = cast(params["wqkv_cross"][:, 2 * D:3 * D, :])    # (L, D, D)  only V rows used
    wo_c = cast(params["wo_cross"])                         # (L, D, D)
    w1 = cast(params["w_ff1"])                              # (L, F, D)
    w2 = cast(params["w_ff2"])                              # (L, D, F)
    small = pack_small_params(params, D)                    # (L, 13, D) one DMA per layer
    b_ff1 = params["b_ff1"].astype(jnp.float32)             # (L, 1, F)

    # final projection padded to a lane-dense 384-wide output; sliced back below.
    wf = jnp.zeros((FPAD, D), weights_dtype).at[:INPUT_FEATS].set(cast(params["w_final"]))
    bf = jnp.zeros((1, FPAD), jnp.float32).at[:, :INPUT_FEATS].set(
        params["b_final"].astype(jnp.float32))

    def layer_spec(shape):
        return pl.BlockSpec((1,) + tuple(shape[1:]), lambda ib, l: (l, 0, 0))

    in_specs = [
        pl.BlockSpec((T, D), lambda ib, l: (0, 0)),                 # pe     (fetched once)
        pl.BlockSpec((b_block, 1, D), lambda ib, l: (ib, 0, 0)),    # memory (per batch block)
        layer_spec(wqkv_s.shape), layer_spec(wo_s.shape),
        layer_spec(wv_c.shape), layer_spec(wo_c.shape),
        layer_spec(w1.shape), layer_spec(w2.shape),
        layer_spec(small.shape), layer_spec(b_ff1.shape),
        pl.BlockSpec((FPAD, D), lambda ib, l: (0, 0)),              # w_final (fetched once)
        pl.BlockSpec((1, FPAD), lambda ib, l: (0, 0)),              # b_final (fetched once)
    ]

    out = pl.pallas_call(
        functools.partial(decoder_kernel, num_heads),
        out_shape=jax.ShapeDtypeStruct((B, T, FPAD), jnp.float32),
        grid_spec=pltpu.PrefetchScalarGridSpec(
            num_scalar_prefetch=0,
            grid=(nb, L),
            in_specs=in_specs,
            out_specs=pl.BlockSpec((b_block, T, FPAD), lambda ib, l: (ib, 0, 0)),
            scratch_shapes=[pltpu.VMEM((b_block * T, D), jnp.float32)],
        ),
        compiler_params=pltpu.CompilerParams(
            dimension_semantics=("parallel", "arbitrary"),
            vmem_limit_bytes=64 * 1024 * 1024,
        ),
    )(pe_q, memory, wqkv_s, wo_s, wv_c, wo_c, w1, w2, small, b_ff1, wf, bf)

    return out[:, :, :INPUT_FEATS].reshape(B, T, 55, 6)


# --------------------------- plain-JAX reference (check) --------------------------

def reference_forward(inp, params, *, seq_len, num_heads):
    B, D = inp.shape
    T = seq_len
    L = params["wqkv_self"].shape[0]
    H = num_heads
    dh = D // H
    x = jnp.tile(params["pe"][:T][None], (B, 1, 1))
    mem = inp.reshape(B, 1, D)

    def ln(v, w, b, eps=1e-5):
        mu = jnp.mean(v, axis=-1, keepdims=True)
        vc = v - mu
        var = jnp.mean(vc * vc, axis=-1, keepdims=True)
        return vc / jnp.sqrt(var + eps) * w + b

    def mha(q_in, kv_in, wqkv, bqkv, wo, bo):
        Tq, Tk = q_in.shape[1], kv_in.shape[1]
        q = q_in @ wqkv[:D].T + bqkv[:D]
        k = kv_in @ wqkv[D:2 * D].T + bqkv[D:2 * D]
        v = kv_in @ wqkv[2 * D:].T + bqkv[2 * D:]
        qh = q.reshape(B, Tq, H, dh).transpose(0, 2, 1, 3)
        kh = k.reshape(B, Tk, H, dh).transpose(0, 2, 1, 3)
        vh = v.reshape(B, Tk, H, dh).transpose(0, 2, 1, 3)
        s = jnp.einsum("bhqd,bhkd->bhqk", qh, kh) / np.sqrt(dh)
        s = s - jnp.max(s, axis=-1, keepdims=True)
        p = jnp.exp(s)
        p = p / jnp.sum(p, axis=-1, keepdims=True)
        o = jnp.einsum("bhqk,bhkd->bhqd", p, vh).transpose(0, 2, 1, 3).reshape(B, Tq, D)
        return o @ wo.T + bo

    c = np.float32(np.sqrt(2.0 / np.pi))
    for l in range(L):
        attn = mha(x, x, params["wqkv_self"][l], params["bqkv_self"][l, 0],
                   params["wo_self"][l], params["bo_self"][l, 0])
        x = ln(x + attn, params["ln1_w"][l, 0], params["ln1_b"][l, 0])

        cross = mha(x, mem, params["wqkv_cross"][l], params["bqkv_cross"][l, 0],
                    params["wo_cross"][l], params["bo_cross"][l, 0])
        x = ln(x + cross, params["ln2_w"][l, 0], params["ln2_b"][l, 0])

        h = x @ params["w_ff1"][l].T + params["b_ff1"][l, 0]
        h = 0.5 * h * (1.0 + jnp.tanh(c * (h + np.float32(0.044715) * h * h * h)))
        ffo = h @ params["w_ff2"][l].T + params["b_ff2"][l, 0]
        x = ln(x + ffo, params["ln3_w"][l, 0], params["ln3_b"][l, 0])

    pose = x @ params["w_final"].T + params["b_final"][0]
    return pose.reshape(B, T, 55, 6)


# ------------------------------------- main --------------------------------------

if __name__ == "__main__":
    SEQ_LEN = 8
    LATENT_DIM = 32          # == input_dim -> self.linear is Identity (as with defaults 256==256)
    NUM_HEADS = 4
    FF_SIZE = 64
    NUM_LAYERS = 2
    MAX_LEN = 64
    B = 2

    key = jax.random.PRNGKey(0)
    pkey, xkey = jax.random.split(key)
    params = init_params(pkey, latent_dim=LATENT_DIM, ff_size=FF_SIZE,
                         num_layers=NUM_LAYERS, input_feats=INPUT_FEATS,
                         max_len=MAX_LEN)
    x = jax.random.normal(xkey, (B, LATENT_DIM), jnp.float32)

    # weights_dtype=jnp.bfloat16 is recommended on v6e/v7x (half the weight DMA bytes,
    # full-rate MXU); f32 is used here so the parity check against the f32 reference is tight.
    pose = motion_decoder_forward(x, params, seq_len=SEQ_LEN, num_heads=NUM_HEADS,
                                  weights_dtype=jnp.float32)
    pose = jax.block_until_ready(pose)
    assert pose.shape == (B, SEQ_LEN, 55, 6)

    ref = jax.block_until_ready(
        reference_forward(x, params, seq_len=SEQ_LEN, num_heads=NUM_HEADS))
    err = float(jnp.max(jnp.abs(pose - ref)))
    assert err < 5e-2, f"kernel/reference mismatch: max abs diff = {err}"

    print("KERNEL_OK")
</pallas_src>

<mosaic_0001>
module attributes {stable_mosaic.version = 11 : i64} {
  func.func @decoder_kernel(%arg0: i32, %arg1: i32, %arg2: memref<8x32xf32, #tpu.memory_space<vmem>>, %arg3: memref<2x1x32xf32, #tpu.memory_space<vmem>>, %arg4: memref<1x96x32xf32, #tpu.memory_space<vmem>>, %arg5: memref<1x32x32xf32, #tpu.memory_space<vmem>>, %arg6: memref<1x32x32xf32, #tpu.memory_space<vmem>>, %arg7: memref<1x32x32xf32, #tpu.memory_space<vmem>>, %arg8: memref<1x64x32xf32, #tpu.memory_space<vmem>>, %arg9: memref<1x32x64xf32, #tpu.memory_space<vmem>>, %arg10: memref<1x13x32xf32, #tpu.memory_space<vmem>>, %arg11: memref<1x1x64xf32, #tpu.memory_space<vmem>>, %arg12: memref<384x32xf32, #tpu.memory_space<vmem>>, %arg13: memref<1x384xf32, #tpu.memory_space<vmem>>, %arg14: memref<2x8x384xf32, #tpu.memory_space<vmem>>, %arg15: memref<16x32xf32, #tpu.memory_space<vmem>>) attributes {dimension_semantics = [#tpu.dimension_semantics<parallel>, #tpu.dimension_semantics<arbitrary>], iteration_bounds = array<i64: 1, 2>, scalar_prefetch = 0 : i64, scratch_operands = 1 : i64, tpu.core_type = #tpu.core_type<tc>, window_params = [{pipeline_mode = #tpu.pipeline_mode<synchronous>, transform_indices = @transform_0, window_bounds = array<i64: 8, 32>}, {transform_indices = @transform_1, window_bounds = array<i64: 2, 1, 32>}, {transform_indices = @transform_2, window_bounds = array<i64: 1, 96, 32>}, {transform_indices = @transform_3, window_bounds = array<i64: 1, 32, 32>}, {transform_indices = @transform_4, window_bounds = array<i64: 1, 32, 32>}, {transform_indices = @transform_5, window_bounds = array<i64: 1, 32, 32>}, {transform_indices = @transform_6, window_bounds = array<i64: 1, 64, 32>}, {transform_indices = @transform_7, window_bounds = array<i64: 1, 32, 64>}, {transform_indices = @transform_8, window_bounds = array<i64: 1, 13, 32>}, {transform_indices = @transform_9, window_bounds = array<i64: 1, 1, 64>}, {pipeline_mode = #tpu.pipeline_mode<synchronous>, transform_indices = @transform_10, window_bounds = array<i64: 384, 32>}, {pipeline_mode = #tpu.pipeline_mode<synchronous>, transform_indices = @transform_11, window_bounds = array<i64: 1, 384>}, {transform_indices = @transform_12, window_bounds = array<i64: 2, 8, 384>}]} {
    %c0_i32 = arith.constant 0 : i32
    %0 = arith.cmpi eq, %arg1, %c0_i32 : i32
    %1 = arith.extui %0 : i1 to i32
    %c0_i32_0 = arith.constant 0 : i32
    %2 = arith.cmpi ne, %1, %c0_i32_0 : i32
    scf.if %2 {
      %c0_80 = arith.constant 0 : index
      %c0_81 = arith.constant 0 : index
      %231 = vector.load %arg2[%c0_80, %c0_81] : memref<8x32xf32, #tpu.memory_space<vmem>>, vector<8x32xf32>
      %232 = tpu.concatenate %231, %231 in 0 : vector<8x32xf32>, vector<8x32xf32> -> vector<16x32xf32>
      %c0_82 = arith.constant 0 : index
      %c0_83 = arith.constant 0 : index
      %233 = vector.load %arg15[%c0_82, %c0_83] : memref<16x32xf32, #tpu.memory_space<vmem>>, vector<16x32xf32>
      tpu.vector_store %arg15[%c0_82, %c0_83], %232 {strides = array<i32>} : memref<16x32xf32, #tpu.memory_space<vmem>>, vector<16x32xf32>,
    } else {
    }
    %c0 = arith.constant 0 : index
    %c0_1 = arith.constant 0 : index
    %c0_2 = arith.constant 0 : index
    %3 = vector.load %arg4[%c0, %c0_1, %c0_2] : memref<1x96x32xf32, #tpu.memory_space<vmem>>, vector<1x96x32xf32>
    %4 = vector.shape_cast %3 : vector<1x96x32xf32> to vector<96x32xf32>
    %c0_3 = arith.constant 0 : index
    %c0_4 = arith.constant 0 : index
    %c0_5 = arith.constant 0 : index
    %5 = vector.load %arg5[%c0_3, %c0_4, %c0_5] : memref<1x32x32xf32, #tpu.memory_space<vmem>>, vector<1x32x32xf32>
    %6 = vector.shape_cast %5 : vector<1x32x32xf32> to vector<32x32xf32>
    %c0_6 = arith.constant 0 : index
    %c0_7 = arith.constant 0 : index
    %c0_8 = arith.constant 0 : index
    %7 = vector.load %arg6[%c0_6, %c0_7, %c0_8] : memref<1x32x32xf32, #tpu.memory_space<vmem>>, vector<1x32x32xf32>
    %8 = vector.shape_cast %7 : vector<1x32x32xf32> to vector<32x32xf32>
    %c0_9 = arith.constant 0 : index
    %c0_10 = arith.constant 0 : index
    %c0_11 = arith.constant 0 : index
    %9 = vector.load %arg7[%c0_9, %c0_10, %c0_11] : memref<1x32x32xf32, #tpu.memory_space<vmem>>, vector<1x32x32xf32>
    %10 = vector.shape_cast %9 : vector<1x32x32xf32> to vector<32x32xf32>
    %c0_12 = arith.constant 0 : index
    %c0_13 = arith.constant 0 : index
    %c0_14 = arith.constant 0 : index
    %11 = vector.load %arg8[%c0_12, %c0_13, %c0_14] : memref<1x64x32xf32, #tpu.memory_space<vmem>>, vector<1x64x32xf32>
    %12 = vector.shape_cast %11 : vector<1x64x32xf32> to vector<64x32xf32>
    %c0_15 = arith.constant 0 : index
    %c0_16 = arith.constant 0 : index
    %c0_17 = arith.constant 0 : index
    %13 = vector.load %arg9[%c0_15, %c0_16, %c0_17] : memref<1x32x64xf32, #tpu.memory_space<vmem>>, vector<1x32x64xf32>
    %14 = vector.shape_cast %13 : vector<1x32x64xf32> to vector<32x64xf32>
    %c0_18 = arith.constant 0 : index
    %c0_19 = arith.constant 0 : index
    %c0_20 = arith.constant 0 : index
    %15 = vector.load %arg10[%c0_18, %c0_19, %c0_20] : memref<1x13x32xf32, #tpu.memory_space<vmem>>, vector<1x13x32xf32>
    %16 = vector.shape_cast %15 : vector<1x13x32xf32> to vector<13x32xf32>
    %17 = vector.extract_strided_slice %16 {offsets = [0, 0], sizes = [1, 32], strides = [1, 1]} : vector<13x32xf32> to vector<1x32xf32>
    %18 = vector.extract_strided_slice %16 {offsets = [1, 0], sizes = [1, 32], strides = [1, 1]} : vector<13x32xf32> to vector<1x32xf32>
    %19 = vector.extract_strided_slice %16 {offsets = [2, 0], sizes = [1, 32], strides = [1, 1]} : vector<13x32xf32> to vector<1x32xf32>
    %20 = vector.extract_strided_slice %16 {offsets = [3, 0], sizes = [1, 32], strides = [1, 1]} : vector<13x32xf32> to vector<1x32xf32>
    %21 = vector.extract_strided_slice %16 {offsets = [4, 0], sizes = [1, 32], strides = [1, 1]} : vector<13x32xf32> to vector<1x32xf32>
    %22 = vector.extract_strided_slice %16 {offsets = [5, 0], sizes = [1, 32], strides = [1, 1]} : vector<13x32xf32> to vector<1x32xf32>
    %23 = vector.extract_strided_slice %16 {offsets = [6, 0], sizes = [1, 32], strides = [1, 1]} : vector<13x32xf32> to vector<1x32xf32>
    %24 = vector.extract_strided_slice %16 {offsets = [7, 0], sizes = [1, 32], strides = [1, 1]} : vector<13x32xf32> to vector<1x32xf32>
    %25 = vector.extract_strided_slice %16 {offsets = [8, 0], sizes = [1, 32], strides = [1, 1]} : vector<13x32xf32> to vector<1x32xf32>
    %26 = vector.extract_strided_slice %16 {offsets = [9, 0], sizes = [1, 32], strides = [1, 1]} : vector<13x32xf32> to vector<1x32xf32>
    %27 = vector.extract_strided_slice %16 {offsets = [10, 0], sizes = [1, 32], strides = [1, 1]} : vector<13x32xf32> to vector<1x32xf32>
    %28 = vector.extract_strided_slice %16 {offsets = [11, 0], sizes = [1, 32], strides = [1, 1]} : vector<13x32xf32> to vector<1x32xf32>
    %29 = vector.extract_strided_slice %16 {offsets = [12, 0], sizes = [1, 32], strides = [1, 1]} : vector<13x32xf32> to vector<1x32xf32>
    %c0_21 = arith.constant 0 : index
    %c0_22 = arith.constant 0 : index
    %c0_23 = arith.constant 0 : index
    %30 = vector.load %arg11[%c0_21, %c0_22, %c0_23] : memref<1x1x64xf32, #tpu.memory_space<vmem>>, vector<1x1x64xf32>
    %31 = vector.shape_cast %30 : vector<1x1x64xf32> to vector<1x64xf32>
    %c0_24 = arith.constant 0 : index
    %c0_25 = arith.constant 0 : index
    %32 = vector.load %arg15[%c0_24, %c0_25] : memref<16x32xf32, #tpu.memory_space<vmem>>, vector<16x32xf32>
    %cst = arith.constant dense<0.000000e+00> : vector<16x96xf32>
    %33 = tpu.matmul %32, %4, %cst {dimension_numbers = #tpu.dot_dimension_numbers<[1], [1], [0], [0], [0, 0, 1, 0], [], []>} : vector<16x32xf32>, vector<96x32xf32>, vector<16x96xf32> -> vector<16x96xf32>
    %34 = vector.extract_strided_slice %33 {offsets = [0, 0], sizes = [16, 32], strides = [1, 1]} : vector<16x96xf32> to vector<16x32xf32>
    %35 = vector.broadcast %17 : vector<1x32xf32> to vector<16x32xf32>
    %36 = arith.addf %34, %35 : vector<16x32xf32>
    %37 = vector.shape_cast %36 : vector<16x32xf32> to vector<2x8x32xf32>
    %38 = vector.extract_strided_slice %33 {offsets = [0, 32], sizes = [16, 32], strides = [1, 1]} : vector<16x96xf32> to vector<16x32xf32>
    %39 = vector.broadcast %18 : vector<1x32xf32> to vector<16x32xf32>
    %40 = arith.addf %38, %39 : vector<16x32xf32>
    %41 = vector.shape_cast %40 : vector<16x32xf32> to vector<2x8x32xf32>
    %42 = vector.extract_strided_slice %33 {offsets = [0, 64], sizes = [16, 32], strides = [1, 1]} : vector<16x96xf32> to vector<16x32xf32>
    %43 = vector.broadcast %19 : vector<1x32xf32> to vector<16x32xf32>
    %44 = arith.addf %42, %43 : vector<16x32xf32>
    %45 = vector.shape_cast %44 : vector<16x32xf32> to vector<2x8x32xf32>
    %cst_26 = arith.constant 0.000000e+00 : f32
    %46 = vector.broadcast %cst_26 : f32 to vector<16x32xf32>
    %47 = vector.extract_strided_slice %37 {offsets = [0, 0, 0], sizes = [2, 8, 8], strides = [1, 1, 1]} : vector<2x8x32xf32> to vector<2x8x8xf32>
    %48 = vector.extract_strided_slice %41 {offsets = [0, 0, 0], sizes = [2, 8, 8], strides = [1, 1, 1]} : vector<2x8x32xf32> to vector<2x8x8xf32>
    %49 = vector.extract_strided_slice %45 {offsets = [0, 0, 0], sizes = [2, 8, 8], strides = [1, 1, 1]} : vector<2x8x32xf32> to vector<2x8x8xf32>
    "tpu.trace_start"() <{level = 10 : i32, message = "btd,bsd->bts"}> : () -> ()
    %cst_27 = arith.constant dense<0.000000e+00> : vector<2x8x8xf32>
    %50 = tpu.matmul %47, %48, %cst_27 {dimension_numbers = #tpu.dot_dimension_numbers<[2], [2], [1], [1], [0, 0, 0, 1, 1, 1], [0], [0]>} : vector<2x8x8xf32>, vector<2x8x8xf32>, vector<2x8x8xf32> -> vector<2x8x8xf32>
    "tpu.trace_stop"() : () -> ()
    %cst_28 = arith.constant 0.353553385 : f32
    %51 = vector.broadcast %cst_28 : f32 to vector<2x8x8xf32>
    %52 = arith.mulf %50, %51 : vector<2x8x8xf32>
    %cst_29 = arith.constant dense<0xFF800000> : vector<2x8xf32>
    %53 = vector.multi_reduction <maximumf>, %52, %cst_29 [2] : vector<2x8x8xf32> to vector<2x8xf32>
    %54 = vector.shape_cast %53 : vector<2x8xf32> to vector<2x8x1xf32>
    %55 = vector.broadcast %54 : vector<2x8x1xf32> to vector<2x8x8xf32>
    %56 = arith.subf %52, %55 : vector<2x8x8xf32>
    %57 = math.exp %56 : vector<2x8x8xf32>
    %cst_30 = arith.constant dense<0.000000e+00> : vector<2x8xf32>
    %58 = vector.multi_reduction <add>, %57, %cst_30 [2] : vector<2x8x8xf32> to vector<2x8xf32>
    %59 = vector.shape_cast %58 : vector<2x8xf32> to vector<2x8x1xf32>
    %60 = tpu.reciprocal %59 {approx = true} : vector<2x8x1xf32> -> vector<2x8x1xf32>
    %61 = vector.broadcast %60 : vector<2x8x1xf32> to vector<2x8x8xf32>
    %62 = arith.mulf %57, %61 : vector<2x8x8xf32>
    "tpu.trace_start"() <{level = 10 : i32, message = "bts,bsd->btd"}> : () -> ()
    %cst_31 = arith.constant dense<0.000000e+00> : vector<2x8x8xf32>
    %63 = tpu.matmul %62, %49, %cst_31 {dimension_numbers = #tpu.dot_dimension_numbers<[2], [1], [1], [2], [0, 0, 0, 1, 1, 2], [0], [0]>} : vector<2x8x8xf32>, vector<2x8x8xf32>, vector<2x8x8xf32> -> vector<2x8x8xf32>
    "tpu.trace_stop"() : () -> ()
    %64 = vector.shape_cast %63 : vector<2x8x8xf32> to vector<16x8xf32>
    %65 = vector.extract_strided_slice %6 {offsets = [0, 0], sizes = [32, 8], strides = [1, 1]} : vector<32x32xf32> to vector<32x8xf32>
    %cst_32 = arith.constant dense<0.000000e+00> : vector<16x32xf32>
    %66 = tpu.matmul %64, %65, %cst_32 {dimension_numbers = #tpu.dot_dimension_numbers<[1], [1], [0], [0], [0, 0, 1, 0], [], []>} : vector<16x8xf32>, vector<32x8xf32>, vector<16x32xf32> -> vector<16x32xf32>
    %67 = arith.addf %46, %66 : vector<16x32xf32>
    %68 = vector.extract_strided_slice %37 {offsets = [0, 0, 8], sizes = [2, 8, 8], strides = [1, 1, 1]} : vector<2x8x32xf32> to vector<2x8x8xf32>
    %69 = vector.extract_strided_slice %41 {offsets = [0, 0, 8], sizes = [2, 8, 8], strides = [1, 1, 1]} : vector<2x8x32xf32> to vector<2x8x8xf32>
    %70 = vector.extract_strided_slice %45 {offsets = [0, 0, 8], sizes = [2, 8, 8], strides = [1, 1, 1]} : vector<2x8x32xf32> to vector<2x8x8xf32>
    "tpu.trace_start"() <{level = 10 : i32, message = "btd,bsd->bts"}> : () -> ()
    %cst_33 = arith.constant dense<0.000000e+00> : vector<2x8x8xf32>
    %71 = tpu.matmul %68, %69, %cst_33 {dimension_numbers = #tpu.dot_dimension_numbers<[2], [2], [1], [1], [0, 0, 0, 1, 1, 1], [0], [0]>} : vector<2x8x8xf32>, vector<2x8x8xf32>, vector<2x8x8xf32> -> vector<2x8x8xf32>
    "tpu.trace_stop"() : () -> ()
    %cst_34 = arith.constant 0.353553385 : f32
    %72 = vector.broadcast %cst_34 : f32 to vector<2x8x8xf32>
    %73 = arith.mulf %71, %72 : vector<2x8x8xf32>
    %cst_35 = arith.constant dense<0xFF800000> : vector<2x8xf32>
    %74 = vector.multi_reduction <maximumf>, %73, %cst_35 [2] : vector<2x8x8xf32> to vector<2x8xf32>
    %75 = vector.shape_cast %74 : vector<2x8xf32> to vector<2x8x1xf32>
    %76 = vector.broadcast %75 : vector<2x8x1xf32> to vector<2x8x8xf32>
    %77 = arith.subf %73, %76 : vector<2x8x8xf32>
    %78 = math.exp %77 : vector<2x8x8xf32>
    %cst_36 = arith.constant dense<0.000000e+00> : vector<2x8xf32>
    %79 = vector.multi_reduction <add>, %78, %cst_36 [2] : vector<2x8x8xf32> to vector<2x8xf32>
    %80 = vector.shape_cast %79 : vector<2x8xf32> to vector<2x8x1xf32>
    %81 = tpu.reciprocal %80 {approx = true} : vector<2x8x1xf32> -> vector<2x8x1xf32>
    %82 = vector.broadcast %81 : vector<2x8x1xf32> to vector<2x8x8xf32>
    %83 = arith.mulf %78, %82 : vector<2x8x8xf32>
    "tpu.trace_start"() <{level = 10 : i32, message = "bts,bsd->btd"}> : () -> ()
    %cst_37 = arith.constant dense<0.000000e+00> : vector<2x8x8xf32>
    %84 = tpu.matmul %83, %70, %cst_37 {dimension_numbers = #tpu.dot_dimension_numbers<[2], [1], [1], [2], [0, 0, 0, 1, 1, 2], [0], [0]>} : vector<2x8x8xf32>, vector<2x8x8xf32>, vector<2x8x8xf32> -> vector<2x8x8xf32>
    "tpu.trace_stop"() : () -> ()
    %85 = vector.shape_cast %84 : vector<2x8x8xf32> to vector<16x8xf32>
    %86 = vector.extract_strided_slice %6 {offsets = [0, 8], sizes = [32, 8], strides = [1, 1]} : vector<32x32xf32> to vector<32x8xf32>
    %cst_38 = arith.constant dense<0.000000e+00> : vector<16x32xf32>
    %87 = tpu.matmul %85, %86, %cst_38 {dimension_numbers = #tpu.dot_dimension_numbers<[1], [1], [0], [0], [0, 0, 1, 0], [], []>} : vector<16x8xf32>, vector<32x8xf32>, vector<16x32xf32> -> vector<16x32xf32>
    %88 = arith.addf %67, %87 : vector<16x32xf32>
    %89 = vector.extract_strided_slice %37 {offsets = [0, 0, 16], sizes = [2, 8, 8], strides = [1, 1, 1]} : vector<2x8x32xf32> to vector<2x8x8xf32>
    %90 = vector.extract_strided_slice %41 {offsets = [0, 0, 16], sizes = [2, 8, 8], strides = [1, 1, 1]} : vector<2x8x32xf32> to vector<2x8x8xf32>
    %91 = vector.extract_strided_slice %45 {offsets = [0, 0, 16], sizes = [2, 8, 8], strides = [1, 1, 1]} : vector<2x8x32xf32> to vector<2x8x8xf32>
    "tpu.trace_start"() <{level = 10 : i32, message = "btd,bsd->bts"}> : () -> ()
    %cst_39 = arith.constant dense<0.000000e+00> : vector<2x8x8xf32>
    %92 = tpu.matmul %89, %90, %cst_39 {dimension_numbers = #tpu.dot_dimension_numbers<[2], [2], [1], [1], [0, 0, 0, 1, 1, 1], [0], [0]>} : vector<2x8x8xf32>, vector<2x8x8xf32>, vector<2x8x8xf32> -> vector<2x8x8xf32>
    "tpu.trace_stop"() : () -> ()
    %cst_40 = arith.constant 0.353553385 : f32
    %93 = vector.broadcast %cst_40 : f32 to vector<2x8x8xf32>
    %94 = arith.mulf %92, %93 : vector<2x8x8xf32>
    %cst_41 = arith.constant dense<0xFF800000> : vector<2x8xf32>
    %95 = vector.multi_reduction <maximumf>, %94, %cst_41 [2] : vector<2x8x8xf32> to vector<2x8xf32>
    %96 = vector.shape_cast %95 : vector<2x8xf32> to vector<2x8x1xf32>
    %97 = vector.broadcast %96 : vector<2x8x1xf32> to vector<2x8x8xf32>
    %98 = arith.subf %94, %97 : vector<2x8x8xf32>
    %99 = math.exp %98 : vector<2x8x8xf32>
    %cst_42 = arith.constant dense<0.000000e+00> : vector<2x8xf32>
    %100 = vector.multi_reduction <add>, %99, %cst_42 [2] : vector<2x8x8xf32> to vector<2x8xf32>
    %101 = vector.shape_cast %100 : vector<2x8xf32> to vector<2x8x1xf32>
    %102 = tpu.reciprocal %101 {approx = true} : vector<2x8x1xf32> -> vector<2x8x1xf32>
    %103 = vector.broadcast %102 : vector<2x8x1xf32> to vector<2x8x8xf32>
    %104 = arith.mulf %99, %103 : vector<2x8x8xf32>
    "tpu.trace_start"() <{level = 10 : i32, message = "bts,bsd->btd"}> : () -> ()
    %cst_43 = arith.constant dense<0.000000e+00> : vector<2x8x8xf32>
    %105 = tpu.matmul %104, %91, %cst_43 {dimension_numbers = #tpu.dot_dimension_numbers<[2], [1], [1], [2], [0, 0, 0, 1, 1, 2], [0], [0]>} : vector<2x8x8xf32>, vector<2x8x8xf32>, vector<2x8x8xf32> -> vector<2x8x8xf32>
    "tpu.trace_stop"() : () -> ()
    %106 = vector.shape_cast %105 : vector<2x8x8xf32> to vector<16x8xf32>
    %107 = vector.extract_strided_slice %6 {offsets = [0, 16], sizes = [32, 8], strides = [1, 1]} : vector<32x32xf32> to vector<32x8xf32>
    %cst_44 = arith.constant dense<0.000000e+00> : vector<16x32xf32>
    %108 = tpu.matmul %106, %107, %cst_44 {dimension_numbers = #tpu.dot_dimension_numbers<[1], [1], [0], [0], [0, 0, 1, 0], [], []>} : vector<16x8xf32>, vector<32x8xf32>, vector<16x32xf32> -> vector<16x32xf32>
    %109 = arith.addf %88, %108 : vector<16x32xf32>
    %110 = vector.extract_strided_slice %37 {offsets = [0, 0, 24], sizes = [2, 8, 8], strides = [1, 1, 1]} : vector<2x8x32xf32> to vector<2x8x8xf32>
    %111 = vector.extract_strided_slice %41 {offsets = [0, 0, 24], sizes = [2, 8, 8], strides = [1, 1, 1]} : vector<2x8x32xf32> to vector<2x8x8xf32>
    %112 = vector.extract_strided_slice %45 {offsets = [0, 0, 24], sizes = [2, 8, 8], strides = [1, 1, 1]} : vector<2x8x32xf32> to vector<2x8x8xf32>
    "tpu.trace_start"() <{level = 10 : i32, message = "btd,bsd->bts"}> : () -> ()
    %cst_45 = arith.constant dense<0.000000e+00> : vector<2x8x8xf32>
    %113 = tpu.matmul %110, %111, %cst_45 {dimension_numbers = #tpu.dot_dimension_numbers<[2], [2], [1], [1], [0, 0, 0, 1, 1, 1], [0], [0]>} : vector<2x8x8xf32>, vector<2x8x8xf32>, vector<2x8x8xf32> -> vector<2x8x8xf32>
    "tpu.trace_stop"() : () -> ()
    %cst_46 = arith.constant 0.353553385 : f32
    %114 = vector.broadcast %cst_46 : f32 to vector<2x8x8xf32>
    %115 = arith.mulf %113, %114 : vector<2x8x8xf32>
    %cst_47 = arith.constant dense<0xFF800000> : vector<2x8xf32>
    %116 = vector.multi_reduction <maximumf>, %115, %cst_47 [2] : vector<2x8x8xf32> to vector<2x8xf32>
    %117 = vector.shape_cast %116 : vector<2x8xf32> to vector<2x8x1xf32>
    %118 = vector.broadcast %117 : vector<2x8x1xf32> to vector<2x8x8xf32>
    %119 = arith.subf %115, %118 : vector<2x8x8xf32>
    %120 = math.exp %119 : vector<2x8x8xf32>
    %cst_48 = arith.constant dense<0.000000e+00> : vector<2x8xf32>
    %121 = vector.multi_reduction <add>, %120, %cst_48 [2] : vector<2x8x8xf32> to vector<2x8xf32>
    %122 = vector.shape_cast %121 : vector<2x8xf32> to vector<2x8x1xf32>
    %123 = tpu.reciprocal %122 {approx = true} : vector<2x8x1xf32> -> vector<2x8x1xf32>
    %124 = vector.broadcast %123 : vector<2x8x1xf32> to vector<2x8x8xf32>
    %125 = arith.mulf %120, %124 : vector<2x8x8xf32>
    "tpu.trace_start"() <{level = 10 : i32, message = "bts,bsd->btd"}> : () -> ()
    %cst_49 = arith.constant dense<0.000000e+00> : vector<2x8x8xf32>
    %126 = tpu.matmul %125, %112, %cst_49 {dimension_numbers = #tpu.dot_dimension_numbers<[2], [1], [1], [2], [0, 0, 0, 1, 1, 2], [0], [0]>} : vector<2x8x8xf32>, vector<2x8x8xf32>, vector<2x8x8xf32> -> vector<2x8x8xf32>
    "tpu.trace_stop"() : () -> ()
    %127 = vector.shape_cast %126 : vector<2x8x8xf32> to vector<16x8xf32>
    %128 = vector.extract_strided_slice %6 {offsets = [0, 24], sizes = [32, 8], strides = [1, 1]} : vector<32x32xf32> to vector<32x8xf32>
    %cst_50 = arith.constant dense<0.000000e+00> : vector<16x32xf32>
    %129 = tpu.matmul %127, %128, %cst_50 {dimension_numbers = #tpu.dot_dimension_numbers<[1], [1], [0], [0], [0, 0, 1, 0], [], []>} : vector<16x8xf32>, vector<32x8xf32>, vector<16x32xf32> -> vector<16x32xf32>
    %130 = arith.addf %109, %129 : vector<16x32xf32>
    %131 = vector.broadcast %20 : vector<1x32xf32> to vector<16x32xf32>
    %132 = arith.addf %130, %131 : vector<16x32xf32>
    %133 = arith.addf %32, %132 : vector<16x32xf32>
    %cst_51 = arith.constant dense<0.000000e+00> : vector<16xf32>
    %134 = vector.multi_reduction <add>, %133, %cst_51 [1] : vector<16x32xf32> to vector<16xf32>
    %135 = vector.shape_cast %134 : vector<16xf32> to vector<16x1xf32>
    %cst_52 = arith.constant 3.200000e+01 : f32
    %136 = vector.broadcast %cst_52 : f32 to vector<16x1xf32>
    %137 = arith.divf %135, %136 : vector<16x1xf32>
    %138 = vector.broadcast %137 : vector<16x1xf32> to vector<16x32xf32>
    %139 = arith.subf %133, %138 : vector<16x32xf32>
    %140 = arith.mulf %139, %139 : vector<16x32xf32>
    %cst_53 = arith.constant dense<0.000000e+00> : vector<16xf32>
    %141 = vector.multi_reduction <add>, %140, %cst_53 [1] : vector<16x32xf32> to vector<16xf32>
    %142 = vector.shape_cast %141 : vector<16xf32> to vector<16x1xf32>
    %cst_54 = arith.constant 3.200000e+01 : f32
    %143 = vector.broadcast %cst_54 : f32 to vector<16x1xf32>
    %144 = arith.divf %142, %143 : vector<16x1xf32>
    %cst_55 = arith.constant 9.99999974E-6 : f32
    %145 = vector.broadcast %cst_55 : f32 to vector<16x1xf32>
    %146 = arith.addf %144, %145 : vector<16x1xf32>
    %147 = math.rsqrt %146 : vector<16x1xf32>
    %148 = vector.broadcast %147 : vector<16x1xf32> to vector<16x32xf32>
    %149 = arith.mulf %139, %148 : vector<16x32xf32>
    %150 = vector.broadcast %21 : vector<1x32xf32> to vector<16x32xf32>
    %151 = arith.mulf %149, %150 : vector<16x32xf32>
    %152 = vector.broadcast %22 : vector<1x32xf32> to vector<16x32xf32>
    %153 = arith.addf %151, %152 : vector<16x32xf32>
    %c0_56 = arith.constant 0 : index
    %c0_57 = arith.constant 0 : index
    %c0_58 = arith.constant 0 : index
    %154 = vector.load %arg3[%c0_56, %c0_57, %c0_58] : memref<2x1x32xf32, #tpu.memory_space<vmem>>, vector<2x1x32xf32>
    %155 = vector.shape_cast %154 : vector<2x1x32xf32> to vector<2x32xf32>
    %cst_59 = arith.constant dense<0.000000e+00> : vector<2x32xf32>
    %156 = tpu.matmul %155, %8, %cst_59 {dimension_numbers = #tpu.dot_dimension_numbers<[1], [1], [0], [0], [0, 0, 1, 0], [], []>} : vector<2x32xf32>, vector<32x32xf32>, vector<2x32xf32> -> vector<2x32xf32>
    %157 = vector.broadcast %23 : vector<1x32xf32> to vector<2x32xf32>
    %158 = arith.addf %156, %157 : vector<2x32xf32>
    %cst_60 = arith.constant dense<0.000000e+00> : vector<2x32xf32>
    %159 = tpu.matmul %158, %10, %cst_60 {dimension_numbers = #tpu.dot_dimension_numbers<[1], [1], [0], [0], [0, 0, 1, 0], [], []>} : vector<2x32xf32>, vector<32x32xf32>, vector<2x32xf32> -> vector<2x32xf32>
    %160 = vector.broadcast %24 : vector<1x32xf32> to vector<2x32xf32>
    %161 = arith.addf %159, %160 : vector<2x32xf32>
    %162 = vector.shape_cast %153 : vector<16x32xf32> to vector<2x8x32xf32>
    %163 = vector.shape_cast %161 : vector<2x32xf32> to vector<2x1x32xf32>
    %164 = vector.broadcast %163 : vector<2x1x32xf32> to vector<2x8x32xf32>
    %165 = arith.addf %162, %164 : vector<2x8x32xf32>
    %166 = vector.shape_cast %165 : vector<2x8x32xf32> to vector<16x32xf32>
    %cst_61 = arith.constant dense<0.000000e+00> : vector<16xf32>
    %167 = vector.multi_reduction <add>, %166, %cst_61 [1] : vector<16x32xf32> to vector<16xf32>
    %168 = vector.shape_cast %167 : vector<16xf32> to vector<16x1xf32>
    %cst_62 = arith.constant 3.200000e+01 : f32
    %169 = vector.broadcast %cst_62 : f32 to vector<16x1xf32>
    %170 = arith.divf %168, %169 : vector<16x1xf32>
    %171 = vector.broadcast %170 : vector<16x1xf32> to vector<16x32xf32>
    %172 = arith.subf %166, %171 : vector<16x32xf32>
    %173 = arith.mulf %172, %172 : vector<16x32xf32>
    %cst_63 = arith.constant dense<0.000000e+00> : vector<16xf32>
    %174 = vector.multi_reduction <add>, %173, %cst_63 [1] : vector<16x32xf32> to vector<16xf32>
    %175 = vector.shape_cast %174 : vector<16xf32> to vector<16x1xf32>
    %cst_64 = arith.constant 3.200000e+01 : f32
    %176 = vector.broadcast %cst_64 : f32 to vector<16x1xf32>
    %177 = arith.divf %175, %176 : vector<16x1xf32>
    %cst_65 = arith.constant 9.99999974E-6 : f32
    %178 = vector.broadcast %cst_65 : f32 to vector<16x1xf32>
    %179 = arith.addf %177, %178 : vector<16x1xf32>
    %180 = math.rsqrt %179 : vector<16x1xf32>
    %181 = vector.broadcast %180 : vector<16x1xf32> to vector<16x32xf32>
    %182 = arith.mulf %172, %181 : vector<16x32xf32>
    %183 = vector.broadcast %25 : vector<1x32xf32> to vector<16x32xf32>
    %184 = arith.mulf %182, %183 : vector<16x32xf32>
    %185 = vector.broadcast %26 : vector<1x32xf32> to vector<16x32xf32>
    %186 = arith.addf %184, %185 : vector<16x32xf32>
    %cst_66 = arith.constant dense<0.000000e+00> : vector<16x64xf32>
    %187 = tpu.matmul %186, %12, %cst_66 {dimension_numbers = #tpu.dot_dimension_numbers<[1], [1], [0], [0], [0, 0, 1, 0], [], []>} : vector<16x32xf32>, vector<64x32xf32>, vector<16x64xf32> -> vector<16x64xf32>
    %188 = vector.broadcast %31 : vector<1x64xf32> to vector<16x64xf32>
    %189 = arith.addf %187, %188 : vector<16x64xf32>
    %cst_67 = arith.constant 5.000000e-01 : f32
    %190 = vector.broadcast %cst_67 : f32 to vector<16x64xf32>
    %191 = arith.mulf %190, %189 : vector<16x64xf32>
    %cst_68 = arith.constant 4.471500e-02 : f32
    %192 = vector.broadcast %cst_68 : f32 to vector<16x64xf32>
    %193 = arith.mulf %192, %189 : vector<16x64xf32>
    %194 = arith.mulf %193, %189 : vector<16x64xf32>
    %195 = arith.mulf %194, %189 : vector<16x64xf32>
    %196 = arith.addf %189, %195 : vector<16x64xf32>
    %cst_69 = arith.constant 0.797884583 : f32
    %197 = vector.broadcast %cst_69 : f32 to vector<16x64xf32>
    %198 = arith.mulf %197, %196 : vector<16x64xf32>
    %199 = math.tanh %198 : vector<16x64xf32>
    %cst_70 = arith.constant 1.000000e+00 : f32
    %200 = vector.broadcast %cst_70 : f32 to vector<16x64xf32>
    %201 = arith.addf %200, %199 : vector<16x64xf32>
    %202 = arith.mulf %191, %201 : vector<16x64xf32>
    %cst_71 = arith.constant dense<0.000000e+00> : vector<16x32xf32>
    %203 = tpu.matmul %202, %14, %cst_71 {dimension_numbers = #tpu.dot_dimension_numbers<[1], [1], [0], [0], [0, 0, 1, 0], [], []>} : vector<16x64xf32>, vector<32x64xf32>, vector<16x32xf32> -> vector<16x32xf32>
    %204 = vector.broadcast %27 : vector<1x32xf32> to vector<16x32xf32>
    %205 = arith.addf %203, %204 : vector<16x32xf32>
    %206 = arith.addf %186, %205 : vector<16x32xf32>
    %cst_72 = arith.constant dense<0.000000e+00> : vector<16xf32>
    %207 = vector.multi_reduction <add>, %206, %cst_72 [1] : vector<16x32xf32> to vector<16xf32>
    %208 = vector.shape_cast %207 : vector<16xf32> to vector<16x1xf32>
    %cst_73 = arith.constant 3.200000e+01 : f32
    %209 = vector.broadcast %cst_73 : f32 to vector<16x1xf32>
    %210 = arith.divf %208, %209 : vector<16x1xf32>
    %211 = vector.broadcast %210 : vector<16x1xf32> to vector<16x32xf32>
    %212 = arith.subf %206, %211 : vector<16x32xf32>
    %213 = arith.mulf %212, %212 : vector<16x32xf32>
    %cst_74 = arith.constant dense<0.000000e+00> : vector<16xf32>
    %214 = vector.multi_reduction <add>, %213, %cst_74 [1] : vector<16x32xf32> to vector<16xf32>
    %215 = vector.shape_cast %214 : vector<16xf32> to vector<16x1xf32>
    %cst_75 = arith.constant 3.200000e+01 : f32
    %216 = vector.broadcast %cst_75 : f32 to vector<16x1xf32>
    %217 = arith.divf %215, %216 : vector<16x1xf32>
    %cst_76 = arith.constant 9.99999974E-6 : f32
    %218 = vector.broadcast %cst_76 : f32 to vector<16x1xf32>
    %219 = arith.addf %217, %218 : vector<16x1xf32>
    %220 = math.rsqrt %219 : vector<16x1xf32>
    %221 = vector.broadcast %220 : vector<16x1xf32> to vector<16x32xf32>
    %222 = arith.mulf %212, %221 : vector<16x32xf32>
    %223 = vector.broadcast %28 : vector<1x32xf32> to vector<16x32xf32>
    %224 = arith.mulf %222, %223 : vector<16x32xf32>
    %225 = vector.broadcast %29 : vector<1x32xf32> to vector<16x32xf32>
    %226 = arith.addf %224, %225 : vector<16x32xf32>
    %c0_77 = arith.constant 0 : index
    %c0_78 = arith.constant 0 : index
    %227 = vector.load %arg15[%c0_77, %c0_78] : memref<16x32xf32, #tpu.memory_space<vmem>>, vector<16x32xf32>
    tpu.vector_store %arg15[%c0_77, %c0_78], %226 {strides = array<i32>} : memref<16x32xf32, #tpu.memory_space<vmem>>, vector<16x32xf32>,
    %c1_i32 = arith.constant 1 : i32
    %228 = arith.cmpi eq, %arg1, %c1_i32 : i32
    %229 = arith.extui %228 : i1 to i32
    %c0_i32_79 = arith.constant 0 : i32
    %230 = arith.cmpi ne, %229, %c0_i32_79 : i32
    scf.if %230 {
      %c0_80 = arith.constant 0 : index
      %c0_81 = arith.constant 0 : index
      %231 = vector.load %arg12[%c0_80, %c0_81] : memref<384x32xf32, #tpu.memory_space<vmem>>, vector<384x32xf32>
      %c0_82 = arith.constant 0 : index
      %c0_83 = arith.constant 0 : index
      %232 = vector.load %arg13[%c0_82, %c0_83] : memref<1x384xf32, #tpu.memory_space<vmem>>, vector<1x384xf32>
      %cst_84 = arith.constant dense<0.000000e+00> : vector<16x384xf32>
      %233 = tpu.matmul %226, %231, %cst_84 {dimension_numbers = #tpu.dot_dimension_numbers<[1], [1], [0], [0], [0, 0, 1, 0], [], []>} : vector<16x32xf32>, vector<384x32xf32>, vector<16x384xf32> -> vector<16x384xf32>
      %234 = vector.broadcast %232 : vector<1x384xf32> to vector<16x384xf32>
      %235 = arith.addf %233, %234 : vector<16x384xf32>
      %236 = vector.shape_cast %235 : vector<16x384xf32> to vector<2x8x384xf32>
      %c0_85 = arith.constant 0 : index
      %c0_86 = arith.constant 0 : index
      %c0_87 = arith.constant 0 : index
      %237 = vector.load %arg14[%c0_85, %c0_86, %c0_87] : memref<2x8x384xf32, #tpu.memory_space<vmem>>, vector<2x8x384xf32>
      tpu.vector_store %arg14[%c0_85, %c0_86, %c0_87], %236 {strides = array<i32>} : memref<2x8x384xf32, #tpu.memory_space<vmem>>, vector<2x8x384xf32>,
    } else {
    }
    return
  }
  func.func @transform_0(%arg0: i32, %arg1: i32) -> (i32, i32) {
    %c0_i32 = arith.constant 0 : i32
    %c0_i32_0 = arith.constant 0 : i32
    %c0_i32_1 = arith.constant 0 : i32
    return %c0_i32, %c0_i32_0 : i32, i32
  }
  func.func @transform_1(%arg0: i32, %arg1: i32) -> (i32, i32, i32) {
    %c0_i32 = arith.constant 0 : i32
    %c0_i32_0 = arith.constant 0 : i32
    %c0_i32_1 = arith.constant 0 : i32
    return %arg0, %c0_i32, %c0_i32_0 : i32, i32, i32
  }
  func.func @transform_2(%arg0: i32, %arg1: i32) -> (i32, i32, i32) {
    %c0_i32 = arith.constant 0 : i32
    %c0_i32_0 = arith.constant 0 : i32
    %c0_i32_1 = arith.constant 0 : i32
    return %arg1, %c0_i32, %c0_i32_0 : i32, i32, i32
  }
  func.func @transform_3(%arg0: i32, %arg1: i32) -> (i32, i32, i32) {
    %c0_i32 = arith.constant 0 : i32
    %c0_i32_0 = arith.constant 0 : i32
    %c0_i32_1 = arith.constant 0 : i32
    return %arg1, %c0_i32, %c0_i32_0 : i32, i32, i32
  }
  func.func @transform_4(%arg0: i32, %arg1: i32) -> (i32, i32, i32) {
    %c0_i32 = arith.constant 0 : i32
    %c0_i32_0 = arith.constant 0 : i32
    %c0_i32_1 = arith.constant 0 : i32
    return %arg1, %c0_i32, %c0_i32_0 : i32, i32, i32
  }
  func.func @transform_5(%arg0: i32, %arg1: i32) -> (i32, i32, i32) {
    %c0_i32 = arith.constant 0 : i32
    %c0_i32_0 = arith.constant 0 : i32
    %c0_i32_1 = arith.constant 0 : i32
    return %arg1, %c0_i32, %c0_i32_0 : i32, i32, i32
  }
  func.func @transform_6(%arg0: i32, %arg1: i32) -> (i32, i32, i32) {
    %c0_i32 = arith.constant 0 : i32
    %c0_i32_0 = arith.constant 0 : i32
    %c0_i32_1 = arith.constant 0 : i32
    return %arg1, %c0_i32, %c0_i32_0 : i32, i32, i32
  }
  func.func @transform_7(%arg0: i32, %arg1: i32) -> (i32, i32, i32) {
    %c0_i32 = arith.constant 0 : i32
    %c0_i32_0 = arith.constant 0 : i32
    %c0_i32_1 = arith.constant 0 : i32
    return %arg1, %c0_i32, %c0_i32_0 : i32, i32, i32
  }
  func.func @transform_8(%arg0: i32, %arg1: i32) -> (i32, i32, i32) {
    %c0_i32 = arith.constant 0 : i32
    %c0_i32_0 = arith.constant 0 : i32
    %c0_i32_1 = arith.constant 0 : i32
    return %arg1, %c0_i32, %c0_i32_0 : i32, i32, i32
  }
  func.func @transform_9(%arg0: i32, %arg1: i32) -> (i32, i32, i32) {
    %c0_i32 = arith.constant 0 : i32
    %c0_i32_0 = arith.constant 0 : i32
    %c0_i32_1 = arith.constant 0 : i32
    return %arg1, %c0_i32, %c0_i32_0 : i32, i32, i32
  }
  func.func @transform_10(%arg0: i32, %arg1: i32) -> (i32, i32) {
    %c0_i32 = arith.constant 0 : i32
    %c0_i32_0 = arith.constant 0 : i32
    %c0_i32_1 = arith.constant 0 : i32
    return %c0_i32, %c0_i32_0 : i32, i32
  }
  func.func @transform_11(%arg0: i32, %arg1: i32) -> (i32, i32) {
    %c0_i32 = arith.constant 0 : i32
    %c0_i32_0 = arith.constant 0 : i32
    %c0_i32_1 = arith.constant 0 : i32
    return %c0_i32, %c0_i32_0 : i32, i32
  }
  func.func @transform_12(%arg0: i32, %arg1: i32) -> (i32, i32, i32) {
    %c0_i32 = arith.constant 0 : i32
    %c0_i32_0 = arith.constant 0 : i32
    %c0_i32_1 = arith.constant 0 : i32
    return %arg0, %c0_i32, %c0_i32_0 : i32, i32, i32
  }
}

</mosaic_0001>

<bundles_post_ra>
// kernel: tpu_custom_call.1
= control target key start
LH: loop header
LB: loop body
LE: loop exit
PB: predicated region body
PF: predicated region fallthrough
CT: control target
= control target key end

     0   :  { %s6503_s0 = inlined_call_operand.hbm [shape: f32[8,32], index: 0, kind: input, shape index: {}]   ;;  %s6504_s1 = inlined_call_operand.hbm [shape: f32[2,1,32], index: 1, kind: input, shape index: {}]   ;;  %s6505_s2 = inlined_call_operand.hbm [shape: f32[2,96,32], index: 2, kind: input, shape index: {}]   ;;  %s6506_s3 = inlined_call_operand.hbm [shape: f32[2,32,32], index: 3, kind: input, shape index: {}]   ;;  %s6507_s4 = inlined_call_operand.hbm [shape: f32[2,32,32], index: 4, kind: input, shape index: {}]   ;;  %s6508_s5 = inlined_call_operand.hbm [shape: f32[2,32,32], index: 5, kind: input, shape index: {}]   ;;  %s6509_s6 = inlined_call_operand.hbm [shape: f32[2,64,32], index: 6, kind: input, shape index: {}]   ;;  %s6510_s7 = inlined_call_operand.hbm [shape: f32[2,32,64], index: 7, kind: input, shape index: {}]   ;;  %s6511_s8 = inlined_call_operand.hbm [shape: f32[2,13,32], index: 8, kind: input, shape index: {}]   ;;  %s6512_s9 = inlined_call_operand.hbm [shape: f32[2,1,64], index: 9, kind: input, shape index: {}]   ;;  %s6513_s10 = inlined_call_operand.hbm [shape: f32[384,32], index: 10, kind: input, shape index: {}]   ;;  %s6514_s11 = inlined_call_operand.hbm [shape: f32[1,384], index: 11, kind: input, shape index: {}]   ;;  %s6515_s12 = inlined_call_operand.hbm [shape: f32[2,8,384], index: 12, kind: output, shape index: {}]  }
   0x1   :  { %6541 = sst [smem:[#allocation34_spill]] %s6503_s0 }
   0x2   :  { %6542 = sst [smem:[#allocation35_spill]] %s6505_s2 }
   0x3   :  { %6543 = sst [smem:[#allocation36_spill]] %s6506_s3 }
   0x4   :  { %6544 = sst [smem:[#allocation37_spill]] %s6507_s4 }
   0x5   :  { %6545 = sst [smem:[#allocation38_spill]] %s6515_s12 }
   0x6   :  { %17 = vsyncpa [#allocation4], 0 }
   0x7   :  { %18 = vsyncpa [#allocation7], 0 }
   0x8   :  { %19 = vsyncpa [#allocation18], 0 }
   0x9   :  { %20 = vsyncpa [#allocation5], 0  ;;  %s5485_s21 = smov 0   ;;  %s5487_s22 = smov 0  }
   0xa   :  { %s5489_s23 = smov 0   ;;  %s5491_s24 = smov 0  }
   0xb   :  { %s5493_s25 = smov 0   ;;  %s5495_s26 = smov 0  }
   0xc LB: > { %6546 = sst [smem:[#allocation26_spill]] %s5367_s22  ;;  %s5514_s27 = sadd.s32 4294967295, %s5383_s26   ;;  %s5383_s26 = sphi %s5495_s26, %s26_s26   ;;  %s5379_s25 = sphi %s5493_s25, %s6603_s25   ;;  %s5375_s24 = sphi %s5491_s24, %s6602_s24   ;;  %s5371_s23 = sphi %s5489_s23, %s6601_s23   ;;  %s5367_s22 = sphi %s5487_s22, %s6600_s22   ;;  %s5363_s21 = sphi %s5485_s21, %s6597_s21  }
   0xd   : > { %6547 = sst [smem:[#allocation27_spill]] %s5375_s24  ;;  %p99_p0 = scmp.ne.s32.totalorder %s5371_s23, %s5367_s22 }
   0xe   : > { %6548 = sst [smem:[#allocation28_spill]] %s5383_s26  ;;  %p100_p1 = scmp.eq.s32.totalorder %s5383_s26, 0 }
   0xf   : > { %6549 = sst [smem:[#allocation29_spill]] %s5514_s27  ;;  %p105_p2 = scmp.ne.s32.totalorder %s5367_s22, %s5363_s21 }
  0x10   : > { %p6517_p3 = scmp.eq.s32.totalorder %s5514_s27, 0  ;;  %p101_p4 = por %p100_p1, %p99_p0 }
  0x11   : > { %p3878_p5 = scmp.ge.s32.totalorder %s5383_s26, 1  ;;  %p366_p7 = scmp.lt.s32.totalorder %s5383_s26, 3 }
  0x12   : > { %p5525_p6 = por %p6517_p3, %p105_p2  ;;  %s5385_s13 = smov [#allocation3]  }
  0x13   : > { %p5530_p8 = pnand %p3878_p5, %p366_p7  ;;  %s379_s14 = sshll.u32 %s5385_s13, 4  ;;  %s380_s14 = int_to_ptr.vmem [resolvable:$true] %s379_s14 }
  0x14   : > { %s6550_s29 = scalar_select %p5525_p6, 1, 0 }
  0x15   : > { %s6552_s30 = scalar_select %p5530_p8, 1, 0 }
  0x16   : > { %6551 = sst [smem:[#allocation30_spill]] %s6550_s29  ;;  %p4733_p9 = pneg %p5530_p8 }
  0x17   : > { %6553 = sst [smem:[#allocation31_spill]] %s6552_s30  ;;  %p4775_p10 = scmp.lt.s32.totalorder %s5383_s26, 2 }
  0x18   : > { %p5539_p11 = pnand %p4733_p9, %p6517_p3  ;;  %s6556_s0 = sld [smem:[#allocation34_spill]] }
  0x19   : > { %p5543_p12 = pnand %p4775_p10, %p101_p4 }
  0x1a   : > { %s6554_s15 = scalar_select %p5539_p11, 1, 0 }
  0x1b   : > { %s6555_s16 = scalar_select %p5543_p12, 1, 0 }
  0x1c   : > { %p5555_p0 = pneg %p5539_p11 }
  0x1e   : > { %s4935_s19 = scalar_lea.hbm %s6556_s0, 128 }
  0x1f   : > { %p4936_p13 = scmp.ne.s32.totalorder %s6556_s0, %s4935_s19  ;;  %p4942_p4 = scmp.lt.u32.totalorder %s4935_s19, %s6556_s0 }
  0x20   : > { %s6557_s13 = scalar_select %p5555_p0, 1, 0 }
  0x21   : > { %p4938_p1 = pnand %p5555_p0, %p4936_p13 }
  0x23   : > { %p4939_p2 = pneg %p4938_p1 }
  0x25   : > { %p4944_p5 = pnand %p4942_p4, %p4939_p2 }
  0x27   : > { %4947 = shalt.err (!%p4944_p5)
}
  0x28   : > { %s4948_s17 = scalar_lea.vmem %s380_s14, 128  ;;  %p4956_p3 = scmp.lt.s32.totalorder %s380_s14, %s380_s14 }
  0x29   : > { %p4949_p7 = scmp.ne.s32.totalorder %s380_s14, %s4948_s17  ;;  %p4957_p6 = scmp.lt.s32.totalorder %s4948_s17, %s4948_s17 }
  0x2b   : > { %p4951_p9 = pnand %p4949_p7, %p5555_p0  ;;  %p4958_p8 = por %p4957_p6, %p4956_p3 }
  0x2d   : > { %p4952_p10 = pneg %p4951_p9 }
  0x2f   : > { %p4959_p12 = pnand %p4958_p8, %p4952_p10 }
  0x31   : > { %4962 = shalt.err (!%p4959_p12)
}
  0x32   : > { %4736 = dma.hbm_to_vmem [thread:$0]  (!%p5539_p11), %s6556_s0, 128, %s380_s14, [#allocation4]  }
  0x33   : > { %s35_s12 = sadd.s32 1, %s5379_s25  ;;  %s430_s28 = sand.u32 1, %s5383_s26  }
  0x34   : > { %p36_p13 = scmp.ge.s32.totalorder %s35_s12, 2  ;;  %s5574_s19 = sand.u32 1, %s5371_s23  }
  0x35   : > { %s4695_s21 = smul.u32 1536, %s5379_s25  ;;  %s6559_s2 = sld [smem:[#allocation35_spill]] }
  0x36   : > { %s6605_s12 = smov (%p36_p13, %s35_s12), 0  ;;  %s4694_s17 = smul.u32 96, %s5574_s19 }
  0x37   : > { %6558 = sst [smem:[#allocation32_spill]] %s6605_s12  ;;  %s89_s14 = ssub.s32 %s5379_s25, %s6605_s12 }
  0x38   : > { %s5588_s0 = sshll.u32 %s5574_s19, 5  ;;  %p90_p3 = scmp.eq.s32.totalorder %s89_s14, 0 }
  0x39   : > { %s434_s26 = scalar_lea.vmem [#allocation8], %s4694_s17  ;;  %s6560_s22 = sadd.s32 1, %s5371_s23 }
  0x3a   : > { %s441_s29 = sshll.u32 %s434_s26, 4  ;;  %s5598_s30 = sshll.u32 %s5379_s25, 9  ;;  %s5595_s29 = int_to_ptr.vmem [resolvable:$true] %s441_s29 }
  0x3b   : > { %s5583_s24 = scalar_lea.hbm %s6559_s2, %s4695_s21  ;;  %s5600_s18 = scalar_lea.sflag [#allocation4], %s430_s28 }
  0x3c   : > { %s5593_s27 = scalar_select %p90_p3, %s5371_s23, %s6560_s22  }
  0x3d   : > { %s4963_s21 = scalar_lea.hbm %s5583_s24, 1536  ;;  %p6562_p8 = scmp.ne.s32.totalorder %s6555_s16, 0 }
  0x3e   : > { %6561 = sst [smem:[#allocation33_spill]] %s5593_s27  ;;  %p4964_p6 = scmp.ne.s32.totalorder %s5583_s24, %s4963_s21 }
  0x3f   : > { %p5606_p12 = pneg %p6562_p8  ;;  %s4968_s17 = scalar_lea.hbm %s6559_s2, 3072 }
  0x40   : > { %p4969_p4 = scmp.lt.u32.totalorder %s5583_s24, %s6559_s2  ;;  %p4970_p5 = scmp.lt.u32.totalorder %s4968_s17, %s4963_s21 }
  0x41   : > { %s6563_s20 = scalar_select %p5606_p12, 1, 0 }
  0x42   : > { %p4966_p1 = pnand %p5606_p12, %p4964_p6  ;;  %p4971_p7 = por %p4970_p5, %p4969_p4 }
  0x43   : > { %p4972_p9 = scmp.lt.u32.totalorder %s4963_s21, %s5583_s24 }
  0x44   : > { %p4967_p2 = pneg %p4966_p1 }
  0x45   : > { %p4973_p10 = por %p4972_p9, %p4971_p7 }
  0x47   : > { %p4974_p13 = pnand %p4973_p10, %p4967_p2 }
  0x49   : > { %4977 = shalt.err (!%p4974_p13)
}
  0x4a   : > { %s4978_s28 = scalar_lea.vmem %s5595_s29, 1536  ;;  %s5386_s26 = smov [#allocation8]  }
  0x4b   : > { %p4979_p3 = scmp.ne.s32.totalorder %s5595_s29, %s4978_s28  ;;  %s4983_s22 = sshll.u32 %s5386_s26, 4  ;;  %s4984_s22 = int_to_ptr.vmem [resolvable:$false] %s4983_s22 }
  0x4c   : > { %s4985_s12 = scalar_lea.vmem %s4984_s22, 3072  ;;  %p4986_p11 = scmp.lt.s32.totalorder %s5595_s29, %s4984_s22 }
  0x4d   : > { %p4981_p6 = pnand %p4979_p3, %p5606_p12  ;;  %p4987_p0 = scmp.lt.s32.totalorder %s4985_s12, %s4978_s28 }
  0x4f   : > { %p4982_p1 = pneg %p4981_p6  ;;  %p4988_p4 = por %p4987_p0, %p4986_p11 }
  0x51   : > { %p4989_p5 = pnand %p4988_p4, %p4982_p1 }
  0x53   : > { %4992 = shalt.err (!%p4989_p5)
}
  0x54   : > { %s6534_s21 = smov 128   ;;  %s6537_s17 = smov 8  }
  0x55   : > { %4749 = dma.hbm_to_vmem [thread:$0]  (!%p6562_p8), %s5583_s24, 1536, %s5595_s29, %s5600_s18, %s6534_s21, %s6534_s21, %s6537_s17  }
  0x56   : > { %s6564_s3 = sld [smem:[#allocation36_spill]]  ;;  %s455_s22 = scalar_lea.vmem [#allocation9], %s5588_s0 }
  0x57   : > { %s462_s12 = sshll.u32 %s455_s22, 4  ;;  %s5640_s12 = int_to_ptr.vmem [resolvable:$true] %s462_s12 }
  0x5c   : > { %s5637_s28 = scalar_lea.hbm %s6564_s3, %s5598_s30  ;;  %s4998_s29 = scalar_lea.hbm %s6564_s3, 1024 }
  0x5d   : > { %s4993_s2 = scalar_lea.hbm %s5637_s28, 512  ;;  %p4999_p7 = scmp.lt.u32.totalorder %s5637_s28, %s6564_s3 }
  0x5e   : > { %p4994_p11 = scmp.ne.s32.totalorder %s5637_s28, %s4993_s2  ;;  %p5000_p9 = scmp.lt.u32.totalorder %s4998_s29, %s4993_s2 }
  0x5f   : > { %p5002_p13 = scmp.lt.u32.totalorder %s4993_s2, %s5637_s28 }
  0x60   : > { %p4996_p0 = pnand %p4994_p11, %p5606_p12  ;;  %p5001_p10 = por %p5000_p9, %p4999_p7 }
  0x62   : > { %p4997_p2 = pneg %p4996_p0  ;;  %p5003_p3 = por %p5002_p13, %p5001_p10 }
  0x64   : > { %p5004_p6 = pnand %p5003_p3, %p4997_p2 }
  0x66   : > { %5007 = shalt.err (!%p5004_p6)
}
  0x67   : > { %s5008_s22 = scalar_lea.vmem %s5640_s12, 512  ;;  %s5389_s27 = smov [#allocation9]  }
  0x68   : > { %p5009_p1 = scmp.ne.s32.totalorder %s5640_s12, %s5008_s22  ;;  %s5013_s24 = sshll.u32 %s5389_s27, 4  ;;  %s5014_s24 = int_to_ptr.vmem [resolvable:$false] %s5013_s24 }
  0x69   : > { %s5015_s14 = scalar_lea.vmem %s5014_s24, 1024  ;;  %p5016_p11 = scmp.lt.s32.totalorder %s5640_s12, %s5014_s24 }
  0x6a   : > { %p5011_p4 = pnand %p5009_p1, %p5606_p12  ;;  %p5017_p0 = scmp.lt.s32.totalorder %s5015_s14, %s5008_s22 }
  0x6c   : > { %p5012_p5 = pneg %p5011_p4  ;;  %p5018_p7 = por %p5017_p0, %p5016_p11 }
  0x6e   : > { %p5019_p9 = pnand %p5018_p7, %p5012_p5 }
  0x70   : > { %5022 = shalt.err (!%p5019_p9)
}
  0x71   : > { %4752 = dma.hbm_to_vmem [thread:$0]  (!%p6562_p8), %s5637_s28, 512, %s5640_s12, %s5600_s18, %s6534_s21, %s6534_s21, %s6537_s17  }
  0x72   : > { %s6565_s4 = sld [smem:[#allocation37_spill]]  ;;  %s476_s22 = scalar_lea.vmem [#allocation10], %s5588_s0 }
  0x73   : > { %s483_s27 = sshll.u32 %s476_s22, 4  ;;  %s5674_s27 = int_to_ptr.vmem [resolvable:$true] %s483_s27 }
  0x78   : > { %s5671_s26 = scalar_lea.hbm %s6565_s4, %s5598_s30  ;;  %s5028_s12 = scalar_lea.hbm %s6565_s4, 1024 }
  0x79   : > { %s5023_s24 = scalar_lea.hbm %s5671_s26, 512  ;;  %p5029_p3 = scmp.lt.u32.totalorder %s5671_s26, %s6565_s4 }
  0x7a   : > { %p5024_p2 = scmp.ne.s32.totalorder %s5671_s26, %s5023_s24  ;;  %p5030_p6 = scmp.lt.u32.totalorder %s5028_s12, %s5023_s24 }
  0x7b   : > { %p5032_p4 = scmp.lt.u32.totalorder %s5023_s24, %s5671_s26 }
  0x7c   : > { %p5026_p10 = pnand %p5024_p2, %p5606_p12  ;;  %p5031_p1 = por %p5030_p6, %p5029_p3 }
  0x7e   : > { %p5027_p13 = pneg %p5026_p10  ;;  %p5033_p5 = por %p5032_p4, %p5031_p1 }
  0x80   : > { %p5034_p11 = pnand %p5033_p5, %p5027_p13 }
  0x82   : > { %5037 = shalt.err (!%p5034_p11)
}
  0x83   : > { %s5038_s22 = scalar_lea.vmem %s5674_s27, 512  ;;  %s5390_s14 = smov [#allocation10]  }
  0x84   : > { %p5039_p0 = scmp.ne.s32.totalorder %s5674_s27, %s5038_s22  ;;  %s5043_s28 = sshll.u32 %s5390_s14, 4  ;;  %s5044_s28 = int_to_ptr.vmem [resolvable:$false] %s5043_s28 }
  0x85   : > { %s5045_s2 = scalar_lea.vmem %s5044_s28, 1024  ;;  %p5046_p2 = scmp.lt.s32.totalorder %s5674_s27, %s5044_s28 }
  0x86   : > { %p5041_p7 = pnand %p5039_p0, %p5606_p12  ;;  %p5047_p10 = scmp.lt.s32.totalorder %s5045_s2, %s5038_s22 }
  0x88   : > { %p5042_p9 = pneg %p5041_p7  ;;  %p5048_p3 = por %p5047_p10, %p5046_p2 }
  0x8a   : > { %p5049_p6 = pnand %p5048_p3, %p5042_p9 }
  0x8c   : > { %5052 = shalt.err (!%p5049_p6)
}
  0x8d   : > { %4755 = dma.hbm_to_vmem [thread:$0]  (!%p6562_p8), %s5671_s26, 512, %s5674_s27, %s5600_s18, %s6534_s21, %s6534_s21, %s6537_s17  }
  0x8e   : > { %s5705_s29 = scalar_lea.hbm %s6508_s5, %s5598_s30  ;;  %s497_s22 = scalar_lea.vmem [#allocation11], %s5588_s0 }
  0x8f   : > { %s504_s14 = sshll.u32 %s497_s22, 4  ;;  %s3894_s28 = sshll.u32 %s5574_s19, 6  ;;  %s5708_s14 = int_to_ptr.vmem [resolvable:$true] %s504_s14 }
  0x90   : > { %s5053_s2 = scalar_lea.hbm %s5705_s29, 512  ;;  %s5058_s24 = scalar_lea.hbm %s6508_s5, 1024 }
  0x91   : > { %p5054_p13 = scmp.ne.s32.totalorder %s5705_s29, %s5053_s2  ;;  %p5059_p5 = scmp.lt.u32.totalorder %s5705_s29, %s6508_s5 }
  0x92   : > { %p5060_p11 = scmp.lt.u32.totalorder %s5058_s24, %s5053_s2  ;;  %p5062_p7 = scmp.lt.u32.totalorder %s5053_s2, %s5705_s29 }
  0x93   : > { %p5056_p1 = pnand %p5054_p13, %p5606_p12 }
  0x94   : > { %p5061_p0 = por %p5060_p11, %p5059_p5 }
  0x95   : > { %p5057_p4 = pneg %p5056_p1 }
  0x96   : > { %p5063_p9 = por %p5062_p7, %p5061_p0 }
  0x98   : > { %p5064_p2 = pnand %p5063_p9, %p5057_p4 }
  0x9a   : > { %5067 = shalt.err (!%p5064_p2)
}
  0x9b   : > { %s5068_s22 = scalar_lea.vmem %s5708_s14, 512  ;;  %s5391_s26 = smov [#allocation11]  }
  0x9c   : > { %p5069_p10 = scmp.ne.s32.totalorder %s5708_s14, %s5068_s22  ;;  %s5073_s27 = sshll.u32 %s5391_s26, 4  ;;  %s5074_s27 = int_to_ptr.vmem [resolvable:$false] %s5073_s27 }
  0x9d   : > { %s5075_s21 = scalar_lea.vmem %s5074_s27, 1024  ;;  %p5076_p13 = scmp.lt.s32.totalorder %s5708_s14, %s5074_s27 }
  0x9e   : > { %p5071_p3 = pnand %p5069_p10, %p5606_p12  ;;  %p5077_p1 = scmp.lt.s32.totalorder %s5075_s21, %s5068_s22 }
  0xa0   : > { %p5072_p6 = pneg %p5071_p3  ;;  %p5078_p5 = por %p5077_p1, %p5076_p13 }
  0xa2   : > { %p5079_p11 = pnand %p5078_p5, %p5072_p6 }
  0xa4   : > { %5082 = shalt.err (!%p5079_p11)
}
  0xa5   : > { %s6566_s2 = smov 128   ;;  %s4065_s24 = sshll.u32 %s5379_s25, 10 }
  0xa6   : > { %4758 = dma.hbm_to_vmem [thread:$0]  (!%p6562_p8), %s5705_s29, 512, %s5708_s14, %s5600_s18, %s6566_s2, %s6566_s2, %s6537_s17  }
  0xa7   : > { %s5740_s22 = scalar_lea.hbm %s6509_s6, %s4065_s24  ;;  %s518_s27 = scalar_lea.vmem [#allocation12], %s3894_s28 }
  0xa8   : > { %s525_s21 = sshll.u32 %s518_s27, 4  ;;  %s5083_s3 = scalar_lea.hbm %s5740_s22, 1024  ;;  %s5744_s21 = int_to_ptr.vmem [resolvable:$true] %s525_s21 }
  0xa9   : > { %p5084_p4 = scmp.ne.s32.totalorder %s5740_s22, %s5083_s3  ;;  %s5088_s12 = scalar_lea.hbm %s6509_s6, 2048 }
  0xaa   : > { %p5089_p9 = scmp.lt.u32.totalorder %s5740_s22, %s6509_s6  ;;  %p5090_p2 = scmp.lt.u32.totalorder %s5088_s12, %s5083_s3 }
  0xab   : > { %p5086_p0 = pnand %p5084_p4, %p5606_p12  ;;  %p5092_p3 = scmp.lt.u32.totalorder %s5083_s3, %s5740_s22 }
  0xac   : > { %p5091_p10 = por %p5090_p2, %p5089_p9 }
  0xad   : > { %p5087_p7 = pneg %p5086_p0 }
  0xae   : > { %p5093_p6 = por %p5092_p3, %p5091_p10 }
  0xb0   : > { %p5094_p13 = pnand %p5093_p6, %p5087_p7 }
  0xb2   : > { %5097 = shalt.err (!%p5094_p13)
}
  0xb3   : > { %s5098_s28 = scalar_lea.vmem %s5744_s21, 1024  ;;  %s5392_s27 = smov [#allocation12]  }
  0xb4   : > { %p5099_p1 = scmp.ne.s32.totalorder %s5744_s21, %s5098_s28  ;;  %s5103_s29 = sshll.u32 %s5392_s27, 4  ;;  %s5104_s29 = int_to_ptr.vmem [resolvable:$false] %s5103_s29 }
  0xb5   : > { %s5105_s14 = scalar_lea.vmem %s5104_s29, 2048  ;;  %p5106_p4 = scmp.lt.s32.totalorder %s5744_s21, %s5104_s29 }
  0xb6   : > { %p5101_p5 = pnand %p5099_p1, %p5606_p12  ;;  %p5107_p0 = scmp.lt.s32.totalorder %s5105_s14, %s5098_s28 }
  0xb8   : > { %p5102_p11 = pneg %p5101_p5  ;;  %p5108_p9 = por %p5107_p0, %p5106_p4 }
  0xba   : > { %p5109_p2 = pnand %p5108_p9, %p5102_p11 }
  0xbc   : > { %5112 = shalt.err (!%p5109_p2)
}
  0xbd   : > { %4761 = dma.hbm_to_vmem [thread:$0]  (!%p6562_p8), %s5740_s22, 1024, %s5744_s21, %s5600_s18, %s6566_s2, %s6566_s2, %s6537_s17  }
  0xbe   : > { %s5775_s24 = scalar_lea.hbm %s6510_s7, %s5598_s30  ;;  %s539_s26 = scalar_lea.vmem [#allocation13], %s5588_s0 }
  0xbf   : > { %s546_s28 = sshll.u32 %s539_s26, 4  ;;  %s5113_s27 = scalar_lea.hbm %s5775_s24, 512  ;;  %s5778_s28 = int_to_ptr.vmem [resolvable:$true] %s546_s28 }
  0xc0   : > { %p5114_p7 = scmp.ne.s32.totalorder %s5775_s24, %s5113_s27  ;;  %s5118_s21 = scalar_lea.hbm %s6510_s7, 1024 }
  0xc1   : > { %p5119_p6 = scmp.lt.u32.totalorder %s5775_s24, %s6510_s7  ;;  %p5120_p13 = scmp.lt.u32.totalorder %s5118_s21, %s5113_s27 }
  0xc2   : > { %p5116_p10 = pnand %p5114_p7, %p5606_p12  ;;  %p5122_p5 = scmp.lt.u32.totalorder %s5113_s27, %s5775_s24 }
  0xc3   : > { %p5121_p1 = por %p5120_p13, %p5119_p6 }
  0xc4   : > { %p5117_p3 = pneg %p5116_p10 }
  0xc5   : > { %p5123_p11 = por %p5122_p5, %p5121_p1 }
  0xc7   : > { %p5124_p4 = pnand %p5123_p11, %p5117_p3 }
  0xc9   : > { %5127 = shalt.err (!%p5124_p4)
}
  0xca   : > { %s5128_s0 = scalar_lea.vmem %s5778_s28, 512  ;;  %s5393_s3 = smov [#allocation13]  }
  0xcb   : > { %p5129_p0 = scmp.ne.s32.totalorder %s5778_s28, %s5128_s0  ;;  %s5133_s12 = sshll.u32 %s5393_s3, 4  ;;  %s5134_s12 = int_to_ptr.vmem [resolvable:$false] %s5133_s12 }
  0xcc   : > { %s5135_s26 = scalar_lea.vmem %s5134_s12, 1024  ;;  %p5136_p7 = scmp.lt.s32.totalorder %s5778_s28, %s5134_s12 }
  0xcd   : > { %p5131_p9 = pnand %p5129_p0, %p5606_p12  ;;  %p5137_p10 = scmp.lt.s32.totalorder %s5135_s26, %s5128_s0 }
  0xcf   : > { %p5132_p2 = pneg %p5131_p9  ;;  %p5138_p6 = por %p5137_p10, %p5136_p7 }
  0xd1   : > { %p5139_p13 = pnand %p5138_p6, %p5132_p2 }
  0xd3   : > { %5142 = shalt.err (!%p5139_p13)
}
  0xd4   : > { %4764 = dma.hbm_to_vmem [thread:$0]  (!%p6562_p8), %s5775_s24, 512, %s5778_s28, %s5600_s18, %s6566_s2, %s6566_s2, %s6537_s17  }
  0xd5   : > { %s5394_s27 = smov [#allocation6]   ;;  %s5143_s14 = scalar_lea.hbm %s6504_s1, 32 }
  0xd6   : > { %s392_s29 = sshll.u32 %s5394_s27, 4  ;;  %p5144_p3 = scmp.ne.s32.totalorder %s6504_s1, %s5143_s14  ;;  %s393_s29 = int_to_ptr.vmem [resolvable:$true] %s392_s29 }
  0xd7   : > { %p6567_p1 = scmp.ne.s32.totalorder %s6557_s13, 0  ;;  %p5150_p4 = scmp.lt.u32.totalorder %s5143_s14, %s6504_s1 }
  0xd9   : > { %p5146_p5 = pnand %p5144_p3, %p6567_p1 }
  0xdb   : > { %p5147_p11 = pneg %p5146_p5 }
  0xdd   : > { %p5152_p0 = pnand %p5150_p4, %p5147_p11 }
  0xdf   : > { %5155 = shalt.err (!%p5152_p0)
}
  0xe0   : > { %s5156_s24 = scalar_lea.vmem %s393_s29, 32  ;;  %p5164_p10 = scmp.lt.s32.totalorder %s393_s29, %s393_s29 }
  0xe1   : > { %p5157_p9 = scmp.ne.s32.totalorder %s393_s29, %s5156_s24  ;;  %p5165_p6 = scmp.lt.s32.totalorder %s5156_s24, %s5156_s24 }
  0xe3   : > { %p5159_p2 = pnand %p5157_p9, %p6567_p1  ;;  %p5166_p13 = por %p5165_p6, %p5164_p10 }
  0xe5   : > { %p5160_p7 = pneg %p5159_p2 }
  0xe7   : > { %p5167_p8 = pnand %p5166_p13, %p5160_p7 }
  0xe9   : > { %5170 = shalt.err (!%p5167_p8)
}
  0xea   : > { %s5395_s28 = smov 16   ;;  %s5396_s26 = smov 1  }
  0xeb   : > { %p6568_p3 = scmp.ne.s32.totalorder %s6554_s15, 0  ;;  %s3900_s21 = sshll.u32 %s5574_s19, 4 }
  0xec   : > { %s4067_s14 = sshll.u32 %s5379_s25, 8  ;;  %s560_s12 = scalar_lea.vmem [#allocation14], %s3900_s21 }
  0xed   : > { %4739 = dma.hbm_to_vmem [thread:$0]  (!%p6568_p3), %s6504_s1, 32, %s393_s29, [#allocation7], %s5395_s28, %s5395_s28, %s5396_s26  }
  0xee   : > { %s5828_s3 = scalar_lea.hbm %s6511_s8, %s4067_s14  ;;  %s567_s24 = sshll.u32 %s560_s12, 4  ;;  %s5830_s24 = int_to_ptr.vmem [resolvable:$true] %s567_s24 }
  0xef   : > { %s5397_s17 = smov [#allocation16]   ;;  %s5171_s27 = scalar_lea.hbm %s5828_s3, 256 }
  0xf0   : > { %s5832_s4 = sshll.u32 %s5397_s17, 4  ;;  %p5172_p8 = scmp.ne.s32.totalorder %s5828_s3, %s5171_s27  ;;  %s406_s4 = int_to_ptr.vmem [resolvable:$true] %s5832_s4 }
  0xf1   : > { %s5176_s26 = scalar_lea.hbm %s6511_s8, 512  ;;  %p5177_p4 = scmp.lt.u32.totalorder %s5828_s3, %s6511_s8 }
  0xf2   : > { %p5174_p5 = pnand %p5172_p8, %p5606_p12  ;;  %p5178_p0 = scmp.lt.u32.totalorder %s5176_s26, %s5171_s27 }
  0xf3   : > { %p5180_p2 = scmp.lt.u32.totalorder %s5171_s27, %s5828_s3 }
  0xf4   : > { %p5175_p11 = pneg %p5174_p5  ;;  %p5179_p9 = por %p5178_p0, %p5177_p4 }
  0xf6   : > { %p5181_p7 = por %p5180_p2, %p5179_p9 }
  0xf8   : > { %p5182_p10 = pnand %p5181_p7, %p5175_p11 }
  0xfa   : > { %5185 = shalt.err (!%p5182_p10)
}
  0xfb   : > { %s5186_s17 = scalar_lea.vmem %s5830_s24, 256  ;;  %s5398_s21 = smov [#allocation14]  }
  0xfc   : > { %p5187_p6 = scmp.ne.s32.totalorder %s5830_s24, %s5186_s17  ;;  %s5191_s30 = sshll.u32 %s5398_s21, 4  ;;  %s5192_s30 = int_to_ptr.vmem [resolvable:$false] %s5191_s30 }
  0xfd   : > { %s5193_s0 = scalar_lea.vmem %s5192_s30, 512  ;;  %p5194_p5 = scmp.lt.s32.totalorder %s5830_s24, %s5192_s30 }
  0xfe   : > { %p5189_p13 = pnand %p5187_p6, %p5606_p12  ;;  %p5195_p3 = scmp.lt.s32.totalorder %s5193_s0, %s5186_s17 }
 0x100   : > { %p5190_p8 = pneg %p5189_p13  ;;  %p5196_p4 = por %p5195_p3, %p5194_p5 }
 0x102   : > { %p5197_p0 = pnand %p5196_p4, %p5190_p8 }
 0x104   : > { %5200 = shalt.err (!%p5197_p0)
}
 0x105   : > { %p6569_p11 = scmp.ne.s32.totalorder %s6555_s16, 0  ;;  %s6570_s12 = smov 8  }
 0x106   : > { %s5201_s28 = scalar_lea.hbm %s6513_s10, 6144 }
 0x107   : > { %4767 = dma.hbm_to_vmem [thread:$0]  (!%p6569_p11), %s5828_s3, 256, %s5830_s24, %s5600_s18, %s6566_s2, %s6566_s2, %s6570_s12  }
 0x108   : > { %p5202_p3 = scmp.ne.s32.totalorder %s6513_s10, %s5201_s28  ;;  %p5208_p7 = scmp.lt.u32.totalorder %s5201_s28, %s6513_s10 }
 0x10a   : > { %p5204_p9 = pnand %p5202_p3, %p6567_p1 }
 0x10c   : > { %p5205_p2 = pneg %p5204_p9 }
 0x10e   : > { %p5210_p10 = pnand %p5208_p7, %p5205_p2 }
 0x110   : > { %5213 = shalt.err (!%p5210_p10)
}
 0x111   : > { %s5214_s21 = scalar_lea.vmem %s406_s4, 6144  ;;  %p5222_p5 = scmp.lt.s32.totalorder %s406_s4, %s406_s4 }
 0x112   : > { %p5215_p6 = scmp.ne.s32.totalorder %s406_s4, %s5214_s21  ;;  %p5223_p4 = scmp.lt.s32.totalorder %s5214_s21, %s5214_s21 }
 0x114   : > { %p5217_p13 = pnand %p5215_p6, %p6567_p1  ;;  %p5224_p0 = por %p5223_p4, %p5222_p5 }
 0x116   : > { %p5218_p8 = pneg %p5217_p13 }
 0x118   : > { %p5225_p11 = pnand %p5224_p0, %p5218_p8 }
 0x11a   : > { %5228 = shalt.err (!%p5225_p11)
}
 0x11b   : > { %p6571_p3 = scmp.ne.s32.totalorder %s6554_s15, 0  ;;  %s5399_s30 = smov [#allocation17]  }
 0x11c   : > { %s419_s0 = sshll.u32 %s5399_s30, 4  ;;  %s3903_s27 = sshll.u32 %s5379_s25, 4  ;;  %s420_s0 = int_to_ptr.vmem [resolvable:$true] %s419_s0 }
 0x11d   : > { %4742 = dma.hbm_to_vmem [thread:$0]  (!%p6571_p3), %s6513_s10, 6144, %s406_s4, [#allocation7], %s6566_s2, %s6566_s2, %s6570_s12  }
 0x11e   : > { %s5229_s26 = scalar_lea.hbm %s6514_s11, 48 }
 0x11f   : > { %p5230_p11 = scmp.ne.s32.totalorder %s6514_s11, %s5229_s26  ;;  %p5236_p7 = scmp.lt.u32.totalorder %s5229_s26, %s6514_s11 }
 0x121   : > { %p5232_p9 = pnand %p5230_p11, %p6567_p1 }
 0x123   : > { %p5233_p2 = pneg %p5232_p9 }
 0x125   : > { %p5238_p10 = pnand %p5236_p7, %p5233_p2 }
 0x127   : > { %5241 = shalt.err (!%p5238_p10)
}
 0x128   : > { %s5242_s4 = scalar_lea.vmem %s420_s0, 48  ;;  %s5249_s2 = scalar_lea.vmem %s420_s0, 64 }
 0x129   : > { %p5243_p6 = scmp.ne.s32.totalorder %s420_s0, %s5242_s4  ;;  %p5250_p5 = scmp.lt.s32.totalorder %s420_s0, %s420_s0 }
 0x12a   : > { %p5251_p4 = scmp.lt.s32.totalorder %s5249_s2, %s5242_s4 }
 0x12b   : > { %p5245_p13 = pnand %p5243_p6, %p6567_p1 }
 0x12c   : > { %p5252_p0 = por %p5251_p4, %p5250_p5 }
 0x12d   : > { %p5246_p8 = pneg %p5245_p13 }
 0x12f   : > { %p5253_p12 = pnand %p5252_p0, %p5246_p8 }
 0x131   : > { %5256 = shalt.err (!%p5253_p12)
}
 0x132   : > { %4745 = dma.hbm_to_vmem [thread:$0]  (!%p6571_p3), %s6514_s11, 48, %s420_s0, [#allocation18]  }
 0x133   : > { %s5903_s13 = scalar_lea.hbm %s6512_s9, %s3903_s27  ;;  %s580_s29 = scalar_lea.vmem [#allocation15], %s5574_s19 }
 0x134   : > { %s587_s28 = sshll.u32 %s580_s29, 4  ;;  %s5257_s26 = scalar_lea.hbm %s5903_s13, 16  ;;  %s588_s28 = int_to_ptr.vmem [resolvable:$true] %s587_s28 }
 0x135   : > { %p5258_p12 = scmp.ne.s32.totalorder %s5903_s13, %s5257_s26  ;;  %p6572_p1 = scmp.ne.s32.totalorder %s6563_s20, 0 }
 0x136   : > { %s5262_s0 = scalar_lea.hbm %s6512_s9, 32  ;;  %p5263_p3 = scmp.lt.u32.totalorder %s5903_s13, %s6512_s9 }
 0x137   : > { %p5260_p11 = pnand %p5258_p12, %p6572_p1  ;;  %p5264_p2 = scmp.lt.u32.totalorder %s5262_s0, %s5257_s26 }
 0x138   : > { %p5266_p10 = scmp.lt.u32.totalorder %s5257_s26, %s5903_s13 }
 0x139   : > { %p5261_p9 = pneg %p5260_p11  ;;  %p5265_p7 = por %p5264_p2, %p5263_p3 }
 0x13b   : > { %p5267_p6 = por %p5266_p10, %p5265_p7 }
 0x13d   : > { %p5268_p13 = pnand %p5267_p6, %p5261_p9 }
 0x13f   : > { %5271 = shalt.err (!%p5268_p13)
}
 0x140   : > { %s5272_s19 = scalar_lea.vmem %s588_s28, 16  ;;  %s5400_s27 = smov [#allocation15]  }
 0x141   : > { %p5273_p8 = scmp.ne.s32.totalorder %s588_s28, %s5272_s19  ;;  %s5277_s21 = sshll.u32 %s5400_s27, 4  ;;  %s5278_s21 = int_to_ptr.vmem [resolvable:$false] %s5277_s21 }
 0x142   : > { %s5279_s4 = scalar_lea.vmem %s5278_s21, 32  ;;  %p5280_p0 = scmp.lt.s32.totalorder %s588_s28, %s5278_s21 }
 0x143   : > { %p5275_p5 = pnand %p5273_p8, %p6572_p1  ;;  %p5281_p12 = scmp.lt.s32.totalorder %s5279_s4, %s5272_s19 }
 0x145   : > { %p5276_p4 = pneg %p5275_p5  ;;  %p5282_p11 = por %p5281_p12, %p5280_p0 }
 0x147   : > { %p5283_p2 = pnand %p5282_p11, %p5276_p4 }
 0x149   : > { %5286 = shalt.err (!%p5283_p2)
}
 0x14a   : > { %p6573_p3 = scmp.ne.s32.totalorder %s6555_s16, 0  ;;  %s6574_s2 = sld [smem:[#allocation31_spill]] }
 0x14c   : > { %4770 = dma.hbm_to_vmem [thread:$0]  (!%p6573_p3), %s5903_s13, 16, %s588_s28, %s5600_s18  }
 0x150   : > { %p6575_p9 = scmp.ne.s32.totalorder %s6574_s2, 0 }
 0x151   : > { %s6576_s20 = sld [smem:[#allocation29_spill]] (!%p6575_p9) }
 0x152   : > { %596 = sbr.rel (%p6575_p9) target bundleno = 4020 (0xfb4), region = 68 }
 0x157   : > { %p6577_p1 = scmp.eq.s32.totalorder (!%p6575_p9), %s6576_s20, 0 }
 0x159   : > { %5338 = dma.done.wait (%p6577_p1), [#allocation4], 128   ;;  %p6578_p7 = pmov %p6577_p1 }
 0x15a   : > { %p6579_p10 = pmov %p6577_p1 }
 0x15b   : > { %5340 = vsyncadd (%p6578_p7), [#allocation4], 4294967168 }
 0x15c   : > { %5342 = dma.done.wait (%p6579_p10), [#allocation7], 32   ;;  %p6580_p6 = pmov %p6577_p1 }
 0x15d   : > { %s6581_s16 = sld [smem:[#allocation26_spill]]  ;;  %s6582_s12 = sld [smem:[#allocation30_spill]] }
 0x15e   : > { %5344 = vsyncadd (%p6580_p6), [#allocation7], 4294967264  ;;  %s606_s3 = sand.u32 1, %s6576_s20  }
 0x15f   : > { %s607_s30 = scalar_lea.sflag [#allocation4], %s606_s3 }
 0x163   : > { %s5936_s18 = sand.u32 1, %s6581_s16   ;;  %p6583_p13 = scmp.ne.s32.totalorder %s6582_s12, 0 }
 0x164   : > { %s4696_s24 = smul.u32 96, %s5936_s18 }
 0x166   : > { %s5939_s13 = scalar_lea.vmem [#allocation8], %s4696_s24 }
 0x167   : > { %5346 = dma.done.wait (%p6583_p13), %s607_s30, 4880  }
 0x168   : > { %5348 = vsyncadd (%p6583_p13), %s607_s30, 4294962416  ;;  %s3907_s29 = sshll.u32 %s5936_s18, 5  ;;  %s3910_s28 = sshll.u32 %s5936_s18, 6 }
 0x169   : > { %s3912_s26 = sshll.u32 %s5936_s18, 4  ;;  %s5948_s15 = scalar_lea.vmem [#allocation9], %s3907_s29 }
 0x16a   : > { %s5950_s22 = scalar_lea.vmem [#allocation10], %s3907_s29  ;;  %s5952_s0 = scalar_lea.vmem [#allocation11], %s3907_s29 }
 0x16b   : > { %s5954_s14 = scalar_lea.vmem [#allocation12], %s3910_s28  ;;  %s5956_s17 = scalar_lea.vmem [#allocation13], %s3907_s29 }
 0x16c   : > { %s5958_s19 = scalar_lea.vmem [#allocation14], %s3912_s26  ;;  %s672_s27 = scalar_lea.vmem [#allocation15], %s5936_s18 }
 0x16d   : > { %p6584_p8 = pmov %p6577_p1 }
 0x16e   : > { %p6585_p5 = pmov %p6577_p1 }
 0x16f   : > { %5350 = dma.done.wait (%p6584_p8), [#allocation7], 6144  }
 0x170   : > { %5352 = vsyncadd (%p6585_p5), [#allocation7], 4294961152  ;;  %p6586_p4 = pmov %p6577_p1 }
 0x171   : > { %p6587_p0 = pmov %p6577_p1 }
 0x172   : > { %5354 = dma.done.wait (%p6586_p4), [#allocation18], 48  }
 0x173   : > { %5356 = vsyncadd (%p6587_p0), [#allocation18], 4294967248  ;;  %s6588_s21 = sld [smem:[#allocation27_spill]] }
 0x179   : > { %p3915_p12 = scmp.ne.s32.totalorder %s6588_s21, 0 }
 0x17a   : > { %v756_v0 = vld [vmem:[#allocation3] sm:$0xff] (!%p3915_p12)  ;;  %vm757_vm0 = vcmask (!%p3915_p12), 261120  }
 0x17b   : > { %755 = sbr.rel (%p3915_p12) target bundleno = 386 (0x182), region = 120  ;;  %758 = vst.msk [vmem:[#allocation2] sm:$0xff] (!%p3915_p12), %vm757_vm0, %v756_v0  ;;  %759 = vst.msk [vmem:[#allocation2 + $0x8] sm:$0xff] (!%p3915_p12), %vm757_vm0, %v756_v0 }
 0x182 PF: > { %v760_v1 = vld [vmem:[%s5939_s13] sm:$0xff]  ;;  %v761_v2 = vld [vmem:[%s5939_s13 + $0x8] sm:$0xff]  ;;  %vm801_vm1 = vcmask 261120   ;;  %v762_v3 = vld [vmem:[%s5939_s13 + $0x10] sm:$0xff]  ;;  %v919_v4 = vlaneseq  ;;  %s5401_s4 = smov 32   ;;  %v5402_v27 = vmov 0.0  }
 0x183   : > { %v4456_v5 = vpack.c.bf16 %v761_v2, %v760_v1  ;;  %vm5975_vm2 = vmpackc.low %vm801_vm1, %vm801_vm1  ;;  %v763_v7 = vld [vmem:[%s5939_s13 + $0x18] sm:$0xff]  ;;  %v5986_v10 = vld [vmem:[#allocation2] sm:$0xff]  ;;  %4245 = vmatprep.subr.mxu1 %v5402_v27  ;;  %vm5403_vm3 = vmmov 0   ;;  %s5404_s2 = smov 96   ;;  %s5405_s20 = smov 80   ;;  %vm948_vm4 = vcmask 64512  }
 0x184   : > { %v4462_v8 = vpack.c.bf16 %v763_v7, %v762_v3  ;;  %v5980_v9 = vshrl.u32 %v919_v4, 7  ;;  %4242 = vmatprep.mubr.msk.f32.mxu0 %vm801_vm1, %v5986_v10  ;;  %v5996_v12 = vld [vmem:[%s5958_s19] sm:$0xff]  ;;  %v765_v14 = vld [vmem:[%s5939_s13 + $0x28] sm:$0xff]  ;;  %v767_v18 = vld [vmem:[%s5939_s13 + $0x38] sm:$0xff]  ;;  %4247 = vmatprep.mubr.msk.f32.mxu1 %vm5403_vm3, %v5402_v27  ;;  %s5406_s16 = smov 112   ;;  %s5407_s12 = smov 64  }
 0x185   : > { %4458 = vmatprep.subr.msk.bf16.mxu0 %vm5975_vm2, %v4456_v5  ;;  %v764_v13 = vld [vmem:[%s5939_s13 + $0x20] sm:$0xff]  ;;  %v766_v17 = vld [vmem:[%s5939_s13 + $0x30] sm:$0xff]  ;;  %v769_v21 = vld [vmem:[%s5939_s13 + $0x48] sm:$0xff]  ;;  %s5408_s3 = smov 88   ;;  %s5409_s24 = smov 120   ;;  %vm3113_vm6 = vcmask 523264  }
 0x186   : > { %4461 = vmatpush3.bf16.xpose.msk.msra.mxu0 %vm5975_vm2, %v4456_v5  ;;  %v5989_v11 = vsub.s32 1, %v5980_v9  ;;  %v4468_v16 = vpack.c.bf16 %v765_v14, %v764_v13  ;;  %v4474_v19 = vpack.c.bf16 %v767_v18, %v766_v17  ;;  %v768_v20 = vld [vmem:[%s5939_s13 + $0x40] sm:$0xff]  ;;  %v770_v23 = vld [vmem:[%s5939_s13 + $0x50] sm:$0xff]  ;;  %v771_v24 = vld [vmem:[%s5939_s13 + $0x58] sm:$0xff]  ;;  %v6037_v29 = vsub.s32 0, %v5980_v9  ;;  %s5410_s30 = smov 48  }
 0x187   : > { %4464 = vmatprep.subr.msk.bf16.mxu0 %vm5975_vm2, %v4462_v8  ;;  %v4480_v22 = vpack.c.bf16 %v769_v21, %v768_v20  ;;  %v4486_v25 = vpack.c.bf16 %v771_v24, %v770_v23  ;;  %v6026_v26 = vld [vmem:[#allocation2 + $0x8] sm:$0xff]  ;;  %v6091_v58 = vsub.s32 2, %v5980_v9  ;;  %s5411_s13 = smov 104   ;;  %s5412_s29 = smov 72   ;;  %vm6205_vm5 = vmpackc.low %vm948_vm4, %vm948_vm4 }
 0x188   : > { %v928_v15 = vrot.slane %v5996_v12, %v5989_v11  ;;  %v922_v33 = vrot.slane %v5996_v12, %v6037_v29  ;;  %s5413_s28 = smov 56   ;;  %s5414_s26 = smov 40   ;;  %vm4581_vm7 = vmpackc.low %vm3113_vm6, %vm3113_vm6 }
 0x189   : > { %v938_v60 = vrot.slane %v5996_v12, %v6091_v58  ;;  %s6593_s18 = sld [smem:[#allocation27_spill]] }
 0x18a   : > { %930 = vrot.lane.b32.xlu0 %v928_v15, %s5401_s4 }
 0x18e   : > { %4467 = vmatpush3.bf16.xpose.msk.msra.mxu0 %vm5975_vm2, %v4462_v8 }
 0x18f   : > { %4470 = vmatprep.subr.msk.bf16.mxu0 %vm5975_vm2, %v4468_v16  ;;  %p4005_p11 = scmp.ne.s32.totalorder %s6593_s18, 1 }
 0x196   : > { %4473 = vmatpush3.bf16.xpose.msk.msra.mxu0 %vm5975_vm2, %v4468_v16 }
 0x197   : > { %4476 = vmatprep.subr.msk.bf16.mxu0 %vm5975_vm2, %v4474_v19 }
 0x19e   : > { %4479 = vmatpush3.bf16.xpose.msk.msra.mxu0 %vm5975_vm2, %v4474_v19 }
 0x19f   : > { %4482 = vmatprep.subr.msk.bf16.mxu0 %vm5975_vm2, %v4480_v22 }
 0x1a6   : > { %4485 = vmatpush3.bf16.xpose.msk.msra.mxu0 %vm5975_vm2, %v4480_v22 }
 0x1a7   : > { %4488 = vmatprep.subr.msk.bf16.mxu0 %vm5975_vm2, %v4486_v25 }
 0x1ae   : > { %4491 = vmatpush3.bf16.xpose.msk.msra.mxu0 %vm5975_vm2, %v4486_v25 }
 0x1af   : > { %4307 = vmatprep.subr.mxu0 %v5402_v27 }
 0x1b5   : > { %4243 = vmatmul.mubr.msk.f32.vlgmr.msra.gmra.mrb[0].mxu0 %vm801_vm1, %v6026_v26 }
 0x1b6   : > { %4309 = vmatprep.mubr.msk.f32.mxu0 %vm5403_vm3, %v5402_v27 }
 0x1fc   : > { %v931_v28 = vpop.permute.xlu0 %930 }
 0x288   : > { %v6039_v30 = vpop.f32.mrb[0].mxu0 }
 0x289   : > { %v6042_v31 = vadd.f32 %v6039_v30, %v931_v28  ;;  %v6044_v32 = vpop.f32.mrb[1].mxu0  ;;  %v6060_v36 = vadd.f32 %v6039_v30, %v922_v33 }
 0x28a   : > { %v6049_v34 = vadd.f32 %v931_v28, %v6044_v32  ;;  %v6054_v35 = vadd.f32 %v922_v33, %v6044_v32 }
 0x28b   : > { %1025 = vrot.lane.b32.xlu1 %v6042_v31, %s5404_s2 }
 0x28c   : > { %946 = vrot.lane.b32.xlu0 %v6049_v34, %s5404_s2 }
 0x28f   : > { %1804 = vrot.lane.b32.xlu1 %v6049_v34, %s5405_s20 }
 0x290   : > { %1802 = vrot.lane.b32.xlu0 %v6054_v35, %s5406_s16 }
 0x293   : > { %1882 = vrot.lane.b32.xlu1 %v6042_v31, %s5405_s20 }
 0x294   : > { %1880 = vrot.lane.b32.xlu0 %v6060_v36, %s5406_s16 }
 0x2fd   : > { %v1026_v37 = vpop.permute.xlu1 %1025 }
 0x2fe   : > { %v947_v38 = vpop.permute.xlu0 %946 }
 0x2ff   : > { %4246 = vmatpush3.xpose.msk.msra.mxu1 %vm948_vm4, %v947_v38 }
 0x300   : > { %4250 = vmatprep.subr.mxu1 %v5402_v27 }
 0x301   : > { %v1805_v39 = vpop.permute.xlu1 %1804 }
 0x302   : > { %4308 = vmatpush3.xpose.msk.msra.mxu0 %vm948_vm4, %v1805_v39  ;;  %v1803_v40 = vpop.permute.xlu0 %1802  ;;  %4248 = vmatmul.mubr.msk.f32.vlgmr.msra.gmra.mrb[0].mxu1 %vm948_vm4, %v6054_v35 }
 0x303   : > { %4251 = vmatpush3.xpose.msk.msra.mxu1 %vm948_vm4, %v1026_v37  ;;  %4312 = vmatprep.subr.mxu0 %v5402_v27 }
 0x304   : > { %4252 = vmatprep.mubr.msk.f32.mxu1 %vm5403_vm3, %v5402_v27  ;;  %4255 = vmatprep.subr.mxu1 %v5402_v27 }
 0x305   : > { %v1883_v41 = vpop.permute.xlu1 %1882  ;;  %4310 = vmatmul.mubr.msk.f32.vlgmr.msra.gmra.mrb[2].mxu0 %vm948_vm4, %v1803_v40 }
 0x306   : > { %4313 = vmatpush3.xpose.msk.msra.mxu0 %vm948_vm4, %v1883_v41  ;;  %4253 = vmatmul.mubr.msk.f32.vlgmr.msra.gmra.mrb[2].mxu1 %vm948_vm4, %v6060_v36  ;;  %v1881_v42 = vpop.permute.xlu0 %1880 }
 0x307   : > { %4314 = vmatprep.mubr.msk.f32.mxu0 %vm5403_vm3, %v5402_v27  ;;  %4257 = vmatprep.mubr.msk.f32.mxu1 %vm5403_vm3, %v5402_v27 }
 0x308   : > { %4317 = vmatprep.subr.mxu0 %v5402_v27 }
 0x309   : > { %4315 = vmatmul.mubr.msk.f32.vlgmr.msra.gmra.mrb[4].mxu0 %vm948_vm4, %v1881_v42 }
 0x30a   : > { %4319 = vmatprep.mubr.msk.f32.mxu0 %vm5403_vm3, %v5402_v27 }
 0x3d5   : > { %v1020_v43 = vpop.f32.mrb[0].mxu1 }
 0x3d6   : > { %v1102_v44 = vmul.f32 0.35355338, %v1020_v43  ;;  %v4249_v45 = vpop.f32.mrb[1].mxu1 }
 0x3d8   : > { %v1876_v46 = vpop.f32.mrb[2].mxu0  ;;  %v1104_v47 = vsel %vm948_vm4, %v1102_v44, -inf }
 0x3d9   : > { %v4311_v48 = vpop.f32.mrb[3].mxu0  ;;  %1105 = vmax.xlane.f32.xlu1 %v1104_v47  ;;  %v1098_v49 = vpop.f32.mrb[2].mxu1  ;;  %v1958_v52 = vmul.f32 0.35355338, %v1876_v46 }
 0x3da   : > { %v1103_v50 = vmul.f32 0.35355338, %v1098_v49  ;;  %v4254_v51 = vpop.f32.mrb[3].mxu1 }
 0x3db   : > { %v1960_v57 = vsel %vm948_vm4, %v1958_v52, -inf }
 0x3dc   : > { %v1954_v53 = vpop.f32.mrb[4].mxu0  ;;  %v1107_v54 = vsel %vm948_vm4, %v1103_v50, -inf }
 0x3dd   : > { %v4316_v55 = vpop.f32.mrb[5].mxu0  ;;  %1108 = vmax.xlane.f32.xlu0 %v1107_v54  ;;  %v1959_v56 = vmul.f32 0.35355338, %v1954_v53 }
 0x3df   : > { %v1963_v59 = vsel %vm948_vm4, %v1959_v56, -inf }
 0x3e1   : > { %1961 = vmax.xlane.f32.xlu0 %v1960_v57 }
 0x3e5   : > { %1964 = vmax.xlane.f32.xlu0 %v1963_v59 }
 0x3ea   : > { %940 = vrot.lane.b32.xlu1 %v938_v60, %s5407_s12 }
 0x466   : > { %v1106_v61 = vpop.xlane.xlu1 %1105 }
 0x467   : > { %v1110_v62 = vsub.f32 %v1102_v44, %v1106_v61 }
 0x469   : > { %v1112_v63 = vmul.f32 1.442695, %v1110_v62 }
 0x46a   : > { %v941_v0 = vpop.permute.xlu1 %940  ;;  %v1109_v1 = vpop.xlane.xlu0 %1108 }
 0x46b   : > { %4887 = vpow2.f32 %v1112_v63  ;;  %v6098_v2 = vadd.f32 %v6039_v30, %v941_v0  ;;  %v1111_v3 = vsub.f32 %v1103_v50, %v1109_v1  ;;  %v6114_v15 = vadd.f32 %v941_v0, %v6044_v32 }
 0x46d   : > { %v1114_v4 = vmul.f32 1.442695, %v1111_v3  ;;  %1204 = vrot.lane.b32.xlu1 %v6098_v2, %s5407_s12 }
 0x46e   : > { %v1962_v14 = vpop.xlane.xlu0 %1961 }
 0x46f   : > { %4889 = vpow2.f32 %v1114_v4  ;;  %v1966_v19 = vsub.f32 %v1958_v52, %v1962_v14 }
 0x471   : > { %1282 = vrot.lane.b32.xlu1 %v6049_v34, %s5408_s3  ;;  %v1968_v20 = vmul.f32 1.442695, %v1966_v19 }
 0x472   : > { %v1965_v16 = vpop.xlane.xlu0 %1964 }
 0x473   : > { %v1967_v17 = vsub.f32 %v1959_v56, %v1965_v16 }
 0x475   : > { %v4888_v5 = vpop.eup %4887  ;;  %1280 = vrot.lane.b32.xlu1 %v6054_v35, %s5409_s24  ;;  %v1970_v18 = vmul.f32 1.442695, %v1967_v17 }
 0x476   : > { %v1116_v7 = vsel %vm948_vm4, %v4888_v5, 0.0 }
 0x477   : > { %1117 = vadd.xlane.f32.xlu0 %v1116_v7  ;;  %4891 = vpow2.f32 %v1970_v18 }
 0x478   : > { %4893 = vpow2.f32 %v1968_v20 }
 0x479   : > { %v4890_v8 = vpop.eup %4889  ;;  %1360 = vrot.lane.b32.xlu1 %v6042_v31, %s5408_s3 }
 0x47a   : > { %v1119_v13 = vsel %vm948_vm4, %v4890_v8, 0.0 }
 0x47b   : > { %1120 = vadd.xlane.f32.xlu0 %v1119_v13 }
 0x47d   : > { %1358 = vrot.lane.b32.xlu1 %v6060_v36, %s5409_s24 }
 0x481   : > { %2058 = vrot.lane.b32.xlu1 %v6098_v2, %s5410_s30  ;;  %v4892_v21 = vpop.eup %4891 }
 0x482   : > { %v1975_v22 = vsel %vm948_vm4, %v4892_v21, 0.0  ;;  %v4894_v23 = vpop.eup %4893 }
 0x483   : > { %v1972_v24 = vsel %vm948_vm4, %v4894_v23, 0.0 }
 0x485   : > { %2233 = vrot.lane.b32.xlu1 %v6054_v35, %s5411_s13 }
 0x491   : > { %1127 = vrot.lane.b32.xlu0 %v6114_v15, %s5407_s12 }
 0x4a9   : > { %1976 = vadd.xlane.f32.xlu1 %v1975_v22 }
 0x4b0   : > { %1973 = vadd.xlane.f32.xlu0 %v1972_v24 }
 0x4ba   : > { %2311 = vrot.lane.b32.xlu1 %v6060_v36, %s5411_s13 }
 0x4c6   : > { %1982 = vrot.lane.b32.xlu0 %v6114_v15, %s5410_s30 }
 0x4ca   : > { %2235 = vrot.lane.b32.xlu0 %v6049_v34, %s5412_s29 }
 0x4ce   : > { %2313 = vrot.lane.b32.xlu0 %v6042_v31, %s5412_s29 }
 0x4df   : > { %v1205_v28 = vpop.permute.xlu1 %1204 }
 0x4e3   : > { %v1283_v33 = vpop.permute.xlu1 %1282 }
 0x4e7   : > { %v1281_v31 = vpop.permute.xlu1 %1280 }
 0x4eb   : > { %v1361_v38 = vpop.permute.xlu1 %1360 }
 0x4ef   : > { %v1359_v39 = vpop.permute.xlu1 %1358 }
 0x4f3   : > { %v2059_v40 = vpop.permute.xlu1 %2058 }
 0x4f7   : > { %v2234_v41 = vpop.permute.xlu1 %2233 }
 0x504   : > { %v1118_v25 = vpop.xlane.xlu0 %1117 }
 0x505   : > { %4895 = vrcp.f32 %v1118_v25 }
 0x508   : > { %v1121_v30 = vpop.xlane.xlu0 %1120 }
 0x509   : > { %4897 = vrcp.f32 %v1121_v30 }
 0x50c   : > { %v1128_v32 = vpop.permute.xlu0 %1127 }
 0x50d   : > { %4256 = vmatpush3.msra.mxu1 %v1128_v32 }
 0x50e   : > { %4260 = vmatprep.subr.mxu1 %v5402_v27 }
 0x50f   : > { %v4896_v35 = vpop.eup %4895 }
 0x510   : > { %v1124_v37 = vmul.f32 %v4896_v35, %v4888_v5 }
 0x512   : > { %4258 = vmatmul.mubr.msk.f32.vlgmr.msra.gmra.mrb[4].mxu1 %vm948_vm4, %v1124_v37 }
 0x513   : > { %v4898_v36 = vpop.eup %4897  ;;  %4261 = vmatpush3.msra.mxu1 %v1205_v28  ;;  %4262 = vmatprep.mubr.msk.f32.mxu1 %vm5403_vm3, %v5402_v27 }
 0x514   : > { %v1125_v34 = vmul.f32 %v4898_v36, %v4890_v8  ;;  %4265 = vmatprep.subr.mxu1 %v5402_v27 }
 0x516   : > { %4263 = vmatmul.mubr.msk.f32.vlgmr.msra.gmra.mrb[6].mxu1 %vm948_vm4, %v1125_v34 }
 0x517   : > { %4267 = vmatprep.mubr.msk.f32.mxu1 %vm5403_vm3, %v5402_v27 }
 0x51a   : > { %4266 = vmatpush3.xpose.msk.msra.mxu1 %vm948_vm4, %v1283_v33 }
 0x51b   : > { %4270 = vmatprep.subr.mxu1 %v5402_v27 }
 0x51d   : > { %4268 = vmatmul.mubr.msk.f32.vlgmr.msra.gmra.mrb[8].mxu1 %vm948_vm4, %v1281_v31 }
 0x51e   : > { %4271 = vmatpush3.xpose.msk.msra.mxu1 %vm948_vm4, %v1361_v38  ;;  %4272 = vmatprep.mubr.msk.f32.mxu1 %vm5403_vm3, %v5402_v27 }
 0x51f   : > { %4275 = vmatprep.subr.mxu1 %v5402_v27 }
 0x521   : > { %4273 = vmatmul.mubr.msk.f32.vlgmr.msra.gmra.mrb[10].mxu1 %vm948_vm4, %v1359_v39 }
 0x522   : > { %4277 = vmatprep.mubr.msk.f32.mxu1 %vm5403_vm3, %v5402_v27 }
 0x536   : > { %v1977_v42 = vpop.xlane.xlu1 %1976 }
 0x53a   : > { %v2312_v51 = vpop.permute.xlu1 %2311 }
 0x53d   : > { %v1974_v43 = vpop.xlane.xlu0 %1973 }
 0x53e   : > { %4899 = vrcp.f32 %v1974_v43  ;;  %v772_v43 = vld [vmem:[%s5948_s15] sm:$0xff] }
 0x53f   : > { %4901 = vrcp.f32 %v1977_v42 }
 0x541   : > { %v1983_v44 = vpop.permute.xlu0 %1982 }
 0x542   : > { %4318 = vmatpush3.msra.mxu0 %v1983_v44  ;;  %v773_v44 = vld [vmem:[%s5948_s15 + $0x8] sm:$0xff] }
 0x543   : > { %4322 = vmatprep.subr.mxu0 %v5402_v27 }
 0x545   : > { %v2236_v49 = vpop.permute.xlu0 %2235 }
 0x548   : > { %v4900_v45 = vpop.eup %4899 }
 0x549   : > { %v1980_v46 = vmul.f32 %v4900_v45, %v4894_v23  ;;  %v4902_v47 = vpop.eup %4901  ;;  %v2314_v50 = vpop.permute.xlu0 %2313  ;;  %v6184_v45 = vld [vmem:[%s5948_s15 + $0x10] sm:$0xff] }
 0x54a   : > { %v1981_v48 = vmul.f32 %v4902_v47, %v4892_v21  ;;  %v6187_v47 = vld [vmem:[%s5948_s15 + $0x18] sm:$0xff] }
 0x54b   : > { %4320 = vmatmul.mubr.msk.f32.vlgmr.msra.gmra.mrb[6].mxu0 %vm948_vm4, %v1980_v46  ;;  %v4857_v46 = vpack.i.bf16 %v773_v44, %v772_v43 }
 0x54c   : > { %4323 = vmatpush3.msra.mxu0 %v2059_v40  ;;  %4324 = vmatprep.mubr.msk.f32.mxu0 %vm5403_vm3, %v5402_v27 }
 0x54d   : > { %4338 = vmatprep.subr.mxu0 %v5402_v27 }
 0x54f   : > { %4325 = vmatmul.mubr.msk.f32.vlgmr.msra.gmra.mrb[8].mxu0 %vm948_vm4, %v1981_v48  ;;  %v4862_v48 = vpack.i.bf16 %v6187_v47, %v6184_v45 }
 0x550   : > { %4340 = vmatprep.mubr.msk.f32.mxu0 %vm5403_vm3, %v5402_v27 }
 0x553   : > { %4339 = vmatpush3.xpose.msk.msra.mxu0 %vm948_vm4, %v2236_v49 }
 0x554   : > { %4343 = vmatprep.subr.mxu0 %v5402_v27 }
 0x556   : > { %4341 = vmatmul.mubr.msk.f32.vlgmr.msra.gmra.mrb[10].mxu0 %vm948_vm4, %v2234_v41 }
 0x557   : > { %4344 = vmatpush3.xpose.msk.msra.mxu0 %vm948_vm4, %v2314_v50  ;;  %4345 = vmatprep.mubr.msk.f32.mxu0 %vm5403_vm3, %v5402_v27 }
 0x558   : > { %4348 = vmatprep.subr.mxu0 %v5402_v27 }
 0x55a   : > { %4346 = vmatmul.mubr.msk.f32.vlgmr.msra.gmra.mrb[12].mxu0 %vm948_vm4, %v2312_v51 }
 0x55b   : > { %4350 = vmatprep.mubr.msk.f32.mxu0 %vm5403_vm3, %v5402_v27 }
 0x5e5   : > { %v6161_v52 = vpop.f32.mrb[4].mxu1 }
 0x5e6   : > { %v4259_v53 = vpop.f32.mrb[5].mxu1 }
 0x5e9   : > { %v6163_v54 = vpop.f32.mrb[6].mxu1 }
 0x5ea   : > { %v4264_v55 = vpop.f32.mrb[7].mxu1 }
 0x5f0   : > { %v1354_v56 = vpop.f32.mrb[8].mxu1 }
 0x5f1   : > { %v1436_v57 = vmul.f32 0.35355338, %v1354_v56  ;;  %v4269_v59 = vpop.f32.mrb[9].mxu1 }
 0x5f3   : > { %v1438_v60 = vsel %vm948_vm4, %v1436_v57, -inf }
 0x5f4   : > { %1439 = vmax.xlane.f32.xlu0 %v1438_v60  ;;  %v1432_v61 = vpop.f32.mrb[10].mxu1 }
 0x5f5   : > { %v1437_v62 = vmul.f32 0.35355338, %v1432_v61  ;;  %v4274_v63 = vpop.f32.mrb[11].mxu1 }
 0x5f7   : > { %v1441_v0 = vsel %vm948_vm4, %v1437_v62, -inf }
 0x5f8   : > { %1442 = vmax.xlane.f32.xlu1 %v1441_v0  ;;  %v2715_v0 = vsub.s32 6, %v5980_v9 }
 0x61e   : > { %v6167_v1 = vpop.f32.mrb[6].mxu0 }
 0x61f   : > { %v4321_v3 = vpop.f32.mrb[7].mxu0 }
 0x622   : > { %v6169_v4 = vpop.f32.mrb[8].mxu0 }
 0x623   : > { %v4326_v5 = vpop.f32.mrb[9].mxu0 }
 0x629   : > { %v2307_v7 = vpop.f32.mrb[10].mxu0 }
 0x62a   : > { %v2389_v8 = vmul.f32 0.35355338, %v2307_v7  ;;  %v4342_v13 = vpop.f32.mrb[11].mxu0 }
 0x62c   : > { %v2391_v14 = vsel %vm948_vm4, %v2389_v8, -inf }
 0x62d   : > { %v2385_v16 = vpop.f32.mrb[12].mxu0  ;;  %2392 = vmax.xlane.f32.xlu0 %v2391_v14 }
 0x62e   : > { %v2390_v17 = vmul.f32 0.35355338, %v2385_v16  ;;  %v4347_v18 = vpop.f32.mrb[13].mxu0 }
 0x630   : > { %v2394_v19 = vsel %vm948_vm4, %v2390_v17, -inf }
 0x631   : > { %2395 = vmax.xlane.f32.xlu0 %v2394_v19 }
 0x681   : > { %v1440_v20 = vpop.xlane.xlu0 %1439 }
 0x682   : > { %v1444_v21 = vsub.f32 %v1436_v57, %v1440_v20  ;;  %v4504_v20 = vpack.c.bf16 %v773_v44, %v772_v43 }
 0x684   : > { %v1446_v22 = vmul.f32 1.442695, %v1444_v21  ;;  %v776_v21 = vld [vmem:[%s5950_s22] sm:$0xff] }
 0x685   : > { %v1443_v23 = vpop.xlane.xlu1 %1442 }
 0x686   : > { %4903 = vpow2.f32 %v1446_v22  ;;  %v1445_v24 = vsub.f32 %v1437_v62, %v1443_v23  ;;  %v777_v22 = vld [vmem:[%s5950_s22 + $0x8] sm:$0xff]  ;;  %v5415_v23 = vmov 0.0|0.0  }
 0x688   : > { %v1448_v25 = vmul.f32 1.442695, %v1445_v24  ;;  %v4541_v24 = vpack.c.bf16 %v777_v22, %v776_v21 }
 0x68a   : > { %4905 = vpow2.f32 %v1448_v25  ;;  %v5416_v25 = vmov 1966171168  }
 0x690   : > { %v4904_v28 = vpop.eup %4903 }
 0x691   : > { %v1450_v30 = vsel %vm948_vm4, %v4904_v28, 0.0 }
 0x692   : > { %1451 = vadd.xlane.f32.xlu1 %v1450_v30  ;;  %v2711_v30 = vld [vmem:[#allocation6] sm:$0x1] }
 0x694   : > { %v4906_v32 = vpop.eup %4905 }
 0x695   : > { %v1453_v33 = vsel %vm948_vm4, %v4906_v32, 0.0 }
 0x696   : > { %1454 = vadd.xlane.f32.xlu0 %v1453_v33 }
 0x6a3   : > { %1460 = vrot.lane.b32.xlu1 %v6114_v15, %s5413_s28 }
 0x6ac   : > { %1536 = vrot.lane.b32.xlu0 %v6098_v2, %s5413_s28 }
 0x6ba   : > { %v2393_v35 = vpop.xlane.xlu0 %2392 }
 0x6bb   : > { %v2397_v37 = vsub.f32 %v2389_v8, %v2393_v35  ;;  %v778_v35 = vld [vmem:[%s5950_s22 + $0x10] sm:$0xff] }
 0x6bd   : > { %v2399_v36 = vmul.f32 1.442695, %v2397_v37  ;;  %v779_v37 = vld [vmem:[%s5950_s22 + $0x18] sm:$0xff] }
 0x6be   : > { %v2396_v31 = vpop.xlane.xlu0 %2395 }
 0x6bf   : > { %4907 = vpow2.f32 %v2399_v36  ;;  %v2398_v34 = vsub.f32 %v2390_v17, %v2396_v31 }
 0x6c1   : > { %v2401_v38 = vmul.f32 1.442695, %v2398_v34  ;;  %v4545_v34 = vpack.c.bf16 %v779_v37, %v778_v35 }
 0x6c3   : > { %4909 = vpow2.f32 %v2401_v38 }
 0x6c9   : > { %v4908_v39 = vpop.eup %4907 }
 0x6ca   : > { %v2403_v40 = vsel %vm948_vm4, %v4908_v39, 0.0 }
 0x6cb   : > { %2404 = vadd.xlane.f32.xlu1 %v2403_v40 }
 0x6cd   : > { %v4910_v41 = vpop.eup %4909 }
 0x6ce   : > { %v2406_v42 = vsel %vm948_vm4, %v4910_v41, 0.0 }
 0x6cf   : > { %2407 = vadd.xlane.f32.xlu0 %v2406_v42  ;;  %v4510_v42 = vpack.c.bf16 %v6187_v47, %v6184_v45 }
 0x6dc   : > { %2413 = vrot.lane.b32.xlu1 %v6114_v15, %s5414_s26 }
 0x6e0   : > { %4858 = vrot.lane.b32.xlu1 %v4857_v46, %s5409_s24 }
 0x6e4   : > { %4863 = vrot.lane.b32.xlu1 %v4862_v48, %s5409_s24 }
 0x6e5   : > { %2489 = vrot.lane.b32.xlu0 %v6098_v2, %s5414_s26 }
 0x6e8   : > { %4873 = vrot.lane.b32.xlu1 %v4862_v48, %s5406_s16 }
 0x6e9   : > { %4868 = vrot.lane.b32.xlu0 %v4857_v46, %s5406_s16 }
 0x6ec   : > { %4883 = vrot.lane.b32.xlu1 %v4862_v48, %s5411_s13 }
 0x6ed   : > { %4878 = vrot.lane.b32.xlu0 %v4857_v46, %s5411_s13 }
 0x71f   : > { %v1452_v2 = vpop.xlane.xlu1 %1451 }
 0x720   : > { %4911 = vrcp.f32 %v1452_v2 }
 0x723   : > { %v1455_v15 = vpop.xlane.xlu0 %1454  ;;  %v1461_v49 = vpop.permute.xlu1 %1460 }
 0x724   : > { %4913 = vrcp.f32 %v1455_v15  ;;  %4276 = vmatpush3.msra.mxu1 %v1461_v49 }
 0x725   : > { %4280 = vmatprep.subr.mxu1 %v5402_v27 }
 0x727   : > { %v1537_v53 = vpop.permute.xlu0 %1536 }
 0x72a   : > { %v4912_v50 = vpop.eup %4911 }
 0x72b   : > { %v1458_v51 = vmul.f32 %v4912_v50, %v4904_v28  ;;  %v2721_v28 = vunpack.c.l.s4 %v5416_v25 }
 0x72d   : > { %4278 = vmatmul.mubr.msk.f32.vlgmr.msra.gmra.mrb[12].mxu1 %vm948_vm4, %v1458_v51  ;;  %v2722_v33 = vunpack.c.0.s8 %v2721_v28 }
 0x72e   : > { %v4914_v55 = vpop.eup %4913  ;;  %4281 = vmatpush3.msra.mxu1 %v1537_v53  ;;  %4282 = vmatprep.mubr.msk.f32.mxu1 %vm5403_vm3, %v5402_v27 }
 0x72f   : > { %v1459_v56 = vmul.f32 %v4914_v55, %v4906_v32  ;;  %v2712_v32 = vld [vmem:[#allocation6 + $0x1] sm:$0x1]  ;;  %v6234_v31 = vsub.s32 %v2722_v33, %v5980_v9 }
 0x730   : > { %v2719_v36 = vcombine.low %v2711_v30, %v2712_v32 }
 0x731   : > { %4283 = vmatmul.mubr.msk.f32.vlgmr.msra.gmra.mrb[14].mxu1 %vm948_vm4, %v1459_v56 }
 0x732   : > { %v2726_v38 = vrot.slane %v2719_v36, %v6234_v31 }
 0x758   : > { %v2405_v57 = vpop.xlane.xlu1 %2404 }
 0x759   : > { %4915 = vrcp.f32 %v2405_v57 }
 0x75c   : > { %v2408_v59 = vpop.xlane.xlu0 %2407  ;;  %v2414_v60 = vpop.permute.xlu1 %2413 }
 0x75d   : > { %4917 = vrcp.f32 %v2408_v59  ;;  %4349 = vmatpush3.msra.mxu0 %v2414_v60 }
 0x75e   : > { %4353 = vmatprep.subr.mxu0 %v5402_v27 }
 0x760   : > { %v4859_v61 = vpop.permute.xlu1 %4858  ;;  %v2490_v16 = vpop.permute.xlu0 %2489 }
 0x761   : > { %v4861_v62 = vunpack.i.h.bf16 %v4859_v61  ;;  %v4860_v63 = vunpack.i.l.bf16 %v4859_v61 }
 0x763   : > { %v4916_v3 = vpop.eup %4915  ;;  %v4492_v5 = vpack.c.bf16 %v4861_v62, %v4860_v63  ;;  %v780_v62 = vld [vmem:[%s5952_s0] sm:$0xff] }
 0x764   : > { %v2411_v7 = vmul.f32 %v4916_v3, %v4908_v39  ;;  %v4864_v8 = vpop.permute.xlu1 %4863  ;;  %v2733_v39 = vrot.slane %v2726_v38, %v6234_v31  ;;  %v4869_v44 = vpop.permute.xlu0 %4868  ;;  %v782_v3 = vld [vmem:[%s5952_s0 + $0x10] sm:$0xff] }
 0x765   : > { %4494 = vmatprep.subr.msk.bf16.mxu1 %vm6205_vm5, %v4492_v5  ;;  %v4866_v13 = vunpack.i.h.bf16 %v4864_v8  ;;  %v4865_v14 = vunpack.i.l.bf16 %v4864_v8  ;;  %v4870_v48 = vunpack.i.l.bf16 %v4869_v44  ;;  %v2716_v8 = vrot.slane %v5996_v12, %v2715_v0 }
 0x766   : > { %4351 = vmatmul.mubr.msk.f32.vlgmr.msra.gmra.mrb[14].mxu0 %vm948_vm4, %v2411_v7  ;;  %4497 = vmatpush3.bf16.xpose.msk.msra.mxu1 %vm6205_vm5, %v4492_v5  ;;  %v783_v5 = vld [vmem:[%s5952_s0 + $0x18] sm:$0xff] }
 0x767   : > { %v4918_v17 = vpop.eup %4917  ;;  %4354 = vmatpush3.msra.mxu0 %v2490_v16  ;;  %4355 = vmatprep.mubr.msk.f32.mxu0 %vm5403_vm3, %v5402_v27  ;;  %v4498_v18 = vpack.c.bf16 %v4866_v13, %v4865_v14  ;;  %v4553_v7 = vpack.c.bf16 %v783_v5, %v782_v3 }
 0x768   : > { %v2412_v19 = vmul.f32 %v4918_v17, %v4910_v41  ;;  %4540 = vmatprep.subr.bf16.mxu0 %v5415_v23  ;;  %v4874_v15 = vpop.permute.xlu1 %4873  ;;  %v4879_v50 = vpop.permute.xlu0 %4878  ;;  %v2666_v17 = vsub.s32 3, %v5980_v9 }
 0x769   : > { %4500 = vmatprep.subr.msk.bf16.mxu1 %vm6205_vm5, %v4498_v18  ;;  %v4876_v45 = vunpack.i.h.bf16 %v4874_v15  ;;  %v4875_v47 = vunpack.i.l.bf16 %v4874_v15  ;;  %v4880_v51 = vunpack.i.l.bf16 %v4879_v50 }
 0x76a   : > { %4356 = vmatmul.mubr.msk.f32.vlgmr.msra.gmra.mrb[16].mxu0 %vm948_vm4, %v2412_v19 }
 0x76b   : > { %4377 = vmatprep.mubr.msk.f32.mxu0 %vm5403_vm3, %v5402_v27  ;;  %v4522_v49 = vpack.c.bf16 %v4876_v45, %v4875_v47  ;;  %v2701_v47 = vsub.s32 4, %v5980_v9 }
 0x76c   : > { %v4884_v55 = vpop.permute.xlu1 %4883 }
 0x76d   : > { %v4885_v56 = vunpack.i.l.bf16 %v4884_v55 }
 0x76e   : > { %4503 = vmatpush3.bf16.xpose.msk.msra.mxu1 %vm6205_vm5, %v4498_v18  ;;  %4543 = vmatpush3.bf16.xpose.msk.msra.mxu0 %vm5975_vm2, %v4541_v24  ;;  %v2667_v18 = vrot.slane %v5996_v12, %v2666_v17 }
 0x76f   : > { %4506 = vmatprep.subr.msk.bf16.mxu1 %vm6205_vm5, %v4504_v20  ;;  %4544 = vmatprep.subr.bf16.mxu0 %v5415_v23 }
 0x776   : > { %4547 = vmatpush3.bf16.xpose.msk.msra.mxu0 %vm5975_vm2, %v4545_v34 }
 0x777   : > { %4548 = vmatprep.subr.bf16.mxu0 %v5415_v23 }
 0x77d   : > { %4378 = vmatmul.mubr.msk.f32.vlgmr.msra.gmra.mrb[18].mxu0 %vm801_vm1, %v2733_v39 }
 0x77e   : > { %4388 = vmatprep.mubr.msk.f32.mxu0 %vm5403_vm3, %v5402_v27  ;;  %v4871_v27 = vunpack.i.h.bf16 %v4869_v44 }
 0x780   : > { %v4516_v2 = vpack.c.bf16 %v4871_v27, %v4870_v48 }
 0x800   : > { %v1532_v40 = vpop.f32.mrb[12].mxu1 }
 0x801   : > { %v4279_v41 = vpop.f32.mrb[13].mxu1  ;;  %4293 = vmatprep.mubr.msk.f32.mxu1 %vm948_vm4, %v1532_v40 }
 0x802   : > { %v2820_v41 = vsub.s32 7, %v5980_v9 }
 0x804   : > { %v1608_v43 = vpop.f32.mrb[14].mxu1  ;;  %v2821_v44 = vrot.slane %v5996_v12, %v2820_v41 }
 0x805   : > { %v4284_v46 = vpop.f32.mrb[15].mxu1  ;;  %4294 = vmatmul.mubr.msk.f32.vlgmr.msra.gmra.mrb[16].mxu1 %vm948_vm4, %v1608_v43 }
 0x806   : > { %4509 = vmatpush3.bf16.xpose.msk.msra.mxu1 %vm6205_vm5, %v4504_v20  ;;  %4304 = vmatprep.mubr.msk.f32.mxu1 %vm948_vm4, %v6161_v52  ;;  %v4881_v52 = vunpack.i.h.bf16 %v4879_v50 }
 0x807   : > { %4512 = vmatprep.subr.msk.bf16.mxu1 %vm6205_vm5, %v4510_v42 }
 0x808   : > { %v4528_v53 = vpack.c.bf16 %v4881_v52, %v4880_v51  ;;  %v2702_v51 = vrot.slane %v5996_v12, %v2701_v47 }
 0x80e   : > { %4515 = vmatpush3.bf16.xpose.msk.msra.mxu1 %vm6205_vm5, %v4510_v42 }
 0x80f   : > { %4518 = vmatprep.subr.msk.bf16.mxu1 %vm6205_vm5, %v4516_v2 }
 0x815   : > { %4305 = vmatmul.mubr.msk.f32.vlgmr.msra.gmra.mrb[16].mxu1 %vm948_vm4, %v6163_v54  ;;  %v4886_v54 = vunpack.i.h.bf16 %v4884_v55 }
 0x816   : > { %4521 = vmatpush3.bf16.xpose.msk.msra.mxu1 %vm6205_vm5, %v4516_v2  ;;  %4335 = vmatprep.mubr.msk.f32.mxu1 %vm948_vm4, %v6167_v1 }
 0x817   : > { %4524 = vmatprep.subr.msk.bf16.mxu1 %vm6205_vm5, %v4522_v49  ;;  %v4534_v57 = vpack.c.bf16 %v4886_v54, %v4885_v56 }
 0x81e   : > { %4527 = vmatpush3.bf16.xpose.msk.msra.mxu1 %vm6205_vm5, %v4522_v49  ;;  %v2707_v49 = vsub.s32 5, %v5980_v9  ;;  %v3269_v9 = vld [vmem:[#allocation16 + $0x80] sm:$0xff] (!%p4005_p11) }
 0x81f   : > { %4530 = vmatprep.subr.msk.bf16.mxu1 %vm6205_vm5, %v4528_v53 }
 0x820   : > { %v2708_v54 = vrot.slane %v5996_v12, %v2707_v49 }
 0x825   : > { %4336 = vmatmul.mubr.msk.f32.vlgmr.msra.gmra.mrb[16].mxu1 %vm948_vm4, %v6169_v4  ;;  %v781_v4 = vld [vmem:[%s5952_s0 + $0x8] sm:$0xff] }
 0x826   : > { %4533 = vmatpush3.bf16.xpose.msk.msra.mxu1 %vm6205_vm5, %v4528_v53  ;;  %v4549_v63 = vpack.c.bf16 %v781_v4, %v780_v62 }
 0x827   : > { %4536 = vmatprep.subr.msk.bf16.mxu1 %vm6205_vm5, %v4534_v57 }
 0x828   : > { %4551 = vmatpush3.bf16.xpose.msk.msra.mxu0 %vm5975_vm2, %v4549_v63 }
 0x829   : > { %4552 = vmatprep.subr.bf16.mxu0 %v5415_v23 }
 0x82e   : > { %4539 = vmatpush3.bf16.xpose.msk.msra.mxu1 %vm6205_vm5, %v4534_v57 }
 0x830   : > { %4555 = vmatpush3.bf16.xpose.msk.msra.mxu0 %vm5975_vm2, %v4553_v7  ;;  %v784_v7 = vld [vmem:[%s5954_s14] sm:$0xff] }
 0x839   : > { %v2485_v1 = vpop.f32.mrb[14].mxu0 }
 0x83a   : > { %v4352_v59 = vpop.f32.mrb[15].mxu0  ;;  %4366 = vmatprep.mubr.msk.f32.mxu1 %vm948_vm4, %v2485_v1 }
 0x83d   : > { %v2561_v60 = vpop.f32.mrb[16].mxu0 }
 0x83e   : > { %v4357_v61 = vpop.f32.mrb[17].mxu0  ;;  %4367 = vmatmul.mubr.msk.f32.vlgmr.msra.gmra.mrb[16].mxu1 %vm948_vm4, %v2561_v60 }
 0x850   : > { %v2814_v13 = vpop.f32.mrb[18].mxu0 }
 0x851   : > { %v4379_v14 = vpop.f32.mrb[19].mxu0  ;;  %v2815_v16 = vadd.f32 %v2814_v13, %v2716_v8  ;;  %v785_v8 = vld [vmem:[%s5954_s14 + $0x8] sm:$0xff] }
 0x852   : > { %v4556_v13 = vpack.c.bf16 %v785_v8, %v784_v7 }
 0x853   : > { %4389 = vmatmul.mubr.msk.f32.vlgmr.msra.gmra.mrb[20].mxu0 %vm801_vm1, %v2815_v16 }
 0x854   : > { %4558 = vmatprep.subr.msk.bf16.mxu1 %vm5975_vm2, %v4556_v13 }
 0x855   : > { %4561 = vmatpush3.bf16.xpose.msk.msra.mxu1 %vm5975_vm2, %v4556_v13 }
 0x911   : > { %v4368_v19 = vpop.f32.mrb[16].mxu1 }
 0x912   : > { %v2669_v20 = vadd.f32 %v4368_v19, %v2667_v18  ;;  %v2653_v21 = vpop.f32.mrb[17].mxu1 }
 0x913   : > { %v2668_v22 = vadd.f32 %v2667_v18, %v2653_v21 }
 0x914   : > { %v2671_v23 = vadd.f32 %v2669_v20, %v6026_v26 }
 0x915   : > { %v2670_v24 = vadd.f32 %v2668_v22, %v5986_v10 }
 0x916   : > { %v2675_v25 = vsel %vm801_vm1, %v2671_v23, 0.0 }
 0x917   : > { %2676 = vadd.xlane.f32.xlu1 %v2675_v25  ;;  %v2672_v28 = vsel %vm801_vm1, %v2670_v24, 0.0  ;;  %v786_v25 = vld [vmem:[%s5954_s14 + $0x10] sm:$0xff] }
 0x918   : > { %2673 = vadd.xlane.f32.xlu0 %v2672_v28  ;;  %v787_v28 = vld [vmem:[%s5954_s14 + $0x18] sm:$0xff] }
 0x926   : > { %v2903_v10 = vpop.f32.mrb[20].mxu0 }
 0x927   : > { %v4390_v40 = vpop.f32.mrb[21].mxu0  ;;  %v2904_v2 = vadd.f32 %v2903_v10, %v2821_v44 }
 0x929   : > { %v2914_v45 = vrot.slane %v2904_v2, %v6234_v31 }
 0x92b   : > { %v2915_v50 = vcombine.high %v2914_v45, %v2914_v45  ;;  %v2922_v52 = vrot.slane %v2914_v45, %v6234_v31 }
 0x92d   : > { %v2933_v57 = vrot.slane %v2922_v52, %v6037_v29  ;;  %v2929_v1 = vrot.slane %v2915_v50, %v6234_v31  ;;  %v792_v52 = vld [vmem:[%s5956_s17] sm:$0xff] }
 0x92f   : > { %v2937_v63 = vrot.slane %v2929_v1, %v6037_v29 }
 0x9a4   : > { %v2677_v30 = vpop.xlane.xlu1 %2676 }
 0x9a5   : > { %v2680_v32 = vmul.f32 0.03125, %v2677_v30  ;;  %v2674_v33 = vpop.xlane.xlu0 %2673  ;;  %v4562_v30 = vpack.c.bf16 %v787_v28, %v786_v25 }
 0x9a6   : > { %v2679_v35 = vmul.f32 0.03125, %v2674_v33  ;;  %v789_v33 = vld [vmem:[%s5954_s14 + $0x28] sm:$0xff] }
 0x9a7   : > { %v2682_v37 = vsub.f32 %v2671_v23, %v2680_v32  ;;  %4564 = vmatprep.subr.msk.bf16.mxu1 %vm5975_vm2, %v4562_v30  ;;  %v788_v32 = vld [vmem:[%s5954_s14 + $0x20] sm:$0xff] }
 0x9a8   : > { %v2681_v36 = vsub.f32 %v2670_v24, %v2679_v35  ;;  %4567 = vmatpush3.bf16.xpose.msk.msra.mxu1 %vm5975_vm2, %v4562_v30  ;;  %v4568_v35 = vpack.c.bf16 %v789_v33, %v788_v32 }
 0x9a9   : > { %v2684_v39 = vmul.f32 %v2682_v37, %v2682_v37 }
 0x9aa   : > { %v2683_v34 = vmul.f32 %v2681_v36, %v2681_v36  ;;  %4570 = vmatprep.subr.msk.bf16.mxu1 %vm5975_vm2, %v4568_v35 }
 0x9ab   : > { %v2688_v26 = vsel %vm801_vm1, %v2684_v39, 0.0 }
 0x9ac   : > { %v2685_v38 = vsel %vm801_vm1, %v2683_v34, 0.0 }
 0x9ad   : > { %2686 = vadd.xlane.f32.xlu0 %v2685_v38 }
 0x9b0   : > { %4573 = vmatpush3.bf16.xpose.msk.msra.mxu1 %vm5975_vm2, %v4568_v35 }
 0x9b1   : > { %2689 = vadd.xlane.f32.xlu0 %v2688_v26 }
 0xa3a   : > { %v2687_v42 = vpop.xlane.xlu0 %2686 }
 0xa3b   : > { %v2691_v43 = vmul.f32 0.03125, %v2687_v42  ;;  %v6344_v42 = vld [vmem:[%s5958_s19 + $0x8] sm:$0x1f] }
 0xa3d   : > { %v2693_v46 = vadd.f32 1e-05, %v2691_v43  ;;  %v2971_v43 = vrot.slane %v6344_v42, %v6037_v29 }
 0xa3e   : > { %v2690_v27 = vpop.xlane.xlu0 %2689 }
 0xa3f   : > { %4919 = vrsqrt.f32 %v2693_v46  ;;  %v2692_v48 = vmul.f32 0.03125, %v2690_v27  ;;  %v2977_v46 = vrot.slane %v6344_v42, %v5989_v11 }
 0xa41   : > { %v2694_v15 = vadd.f32 1e-05, %v2692_v48 }
 0xa43   : > { %4921 = vrsqrt.f32 %v2694_v15 }
 0xa49   : > { %v4920_v53 = vpop.eup %4919 }
 0xa4a   : > { %v2697_v55 = vmul.f32 %v4920_v53, %v2681_v36  ;;  %v791_v36 = vld [vmem:[%s5954_s14 + $0x38] sm:$0xff] }
 0xa4c   : > { %v2703_v56 = vmul.f32 %v2702_v51, %v2697_v55  ;;  %v794_v55 = vld [vmem:[%s5956_s17 + $0x10] sm:$0xff] }
 0xa4d   : > { %v4922_v59 = vpop.eup %4921 }
 0xa4e   : > { %v2709_v60 = vadd.f32 %v2708_v54, %v2703_v56  ;;  %v2698_v61 = vmul.f32 %v4922_v59, %v2682_v37  ;;  %v790_v37 = vld [vmem:[%s5954_s14 + $0x30] sm:$0xff] }
 0xa4f   : > { %v4574_v34 = vpack.c.bf16 %v791_v36, %v790_v37 }
 0xa50   : > { %v2940_v62 = vadd.f32 %v2933_v57, %v2709_v60  ;;  %v2704_v4 = vmul.f32 %v2702_v51, %v2698_v61  ;;  %v793_v51 = vld [vmem:[%s5956_s17 + $0x8] sm:$0xff]  ;;  %v3988_v57 = vld [vmem:[%s672_s27] ss:$0 sm:$0xff] }
 0xa51   : > { %4576 = vmatprep.subr.msk.bf16.mxu1 %vm5975_vm2, %v4574_v34  ;;  %v4580_v53 = vpack.c.bf16 %v793_v51, %v792_v52  ;;  %v3244_v51 = vrot.slane %v6344_v42, %v2701_v47  ;;  %v3253_v47 = vld [vmem:[#allocation16] sm:$0xff] (!%p4005_p11) }
 0xa52   : > { %v2942_v3 = vsel %vm801_vm1, %v2940_v62, 0.0  ;;  %v2710_v5 = vadd.f32 %v2708_v54, %v2704_v4  ;;  %4579 = vmatpush3.bf16.xpose.msk.msra.mxu1 %vm5975_vm2, %v4574_v34  ;;  %v795_v54 = vld [vmem:[%s5956_s17 + $0x18] sm:$0xff] }
 0xa53   : > { %2943 = vadd.xlane.f32.xlu1 %v2942_v3  ;;  %v4586_v56 = vpack.c.bf16 %v795_v54, %v794_v55  ;;  %4582 = vmatprep.subr.msk.bf16.mxu0 %vm4581_vm7, %v4580_v53 }
 0xa54   : > { %v2941_v0 = vadd.f32 %v2937_v63, %v2710_v5  ;;  %4585 = vmatpush3.bf16.xpose.msk.msra.mxu0 %vm4581_vm7, %v4580_v53 }
 0xa55   : > { %4588 = vmatprep.subr.msk.bf16.mxu0 %vm4581_vm7, %v4586_v56 }
 0xa56   : > { %v2945_v12 = vsel %vm801_vm1, %v2941_v0, 0.0 }
 0xa57   : > { %2946 = vadd.xlane.f32.xlu0 %v2945_v12 }
 0xa5c   : > { %4591 = vmatpush3.bf16.xpose.msk.msra.mxu0 %vm4581_vm7, %v4586_v56 }
 0xae0   : > { %v2944_v31 = vpop.xlane.xlu1 %2943 }
 0xae1   : > { %v2948_v14 = vmul.f32 0.03125, %v2944_v31 }
 0xae3   : > { %v2950_v16 = vsub.f32 %v2940_v62, %v2948_v14 }
 0xae4   : > { %v2947_v18 = vpop.xlane.xlu0 %2946 }
 0xae5   : > { %v2949_v19 = vmul.f32 0.03125, %v2947_v18  ;;  %v2952_v20 = vmul.f32 %v2950_v16, %v2950_v16 }
 0xae7   : > { %v2951_v21 = vsub.f32 %v2941_v0, %v2949_v19  ;;  %v2954_v22 = vsel %vm801_vm1, %v2952_v20, 0.0 }
 0xae8   : > { %2955 = vadd.xlane.f32.xlu1 %v2954_v22 }
 0xae9   : > { %v2953_v23 = vmul.f32 %v2951_v21, %v2951_v21 }
 0xaeb   : > { %v2957_v24 = vsel %vm801_vm1, %v2953_v23, 0.0  ;;  %v3112_v23 = vrot.slane %v6344_v42, %v6091_v58 }
 0xaec   : > { %2958 = vadd.xlane.f32.xlu0 %v2957_v24 }
 0xb75   : > { %v2956_v38 = vpop.xlane.xlu1 %2955 }
 0xb76   : > { %v2960_v39 = vmul.f32 0.03125, %v2956_v38 }
 0xb78   : > { %v2962_v26 = vadd.f32 1e-05, %v2960_v39 }
 0xb79   : > { %v2959_v10 = vpop.xlane.xlu0 %2958 }
 0xb7a   : > { %4923 = vrsqrt.f32 %v2962_v26  ;;  %v2961_v40 = vmul.f32 0.03125, %v2959_v10 }
 0xb7c   : > { %v2963_v41 = vadd.f32 1e-05, %v2961_v40 }
 0xb7e   : > { %4925 = vrsqrt.f32 %v2963_v41 }
 0xb84   : > { %v4924_v44 = vpop.eup %4923 }
 0xb85   : > { %v2966_v27 = vmul.f32 %v4924_v44, %v2950_v16 }
 0xb87   : > { %v2972_v48 = vmul.f32 %v2971_v43, %v2966_v27 }
 0xb88   : > { %v4926_v2 = vpop.eup %4925 }
 0xb89   : > { %v2967_v15 = vmul.f32 %v4926_v2, %v2951_v21  ;;  %v2978_v45 = vadd.f32 %v2977_v46, %v2972_v48 }
 0xb8b   : > { %v2973_v49 = vmul.f32 %v2971_v43, %v2967_v15  ;;  %4407 = vmatprep.mubr.msk.f32.mxu1 %vm801_vm1, %v2978_v45 }
 0xb8d   : > { %v2979_v50 = vadd.f32 %v2977_v46, %v2973_v49  ;;  %v3238_v49 = vrot.slane %v6344_v42, %v2666_v17  ;;  %v3270_v17 = vld [vmem:[#allocation16 + $0x88] sm:$0xff] (!%p4005_p11) }
 0xb8e   : > { %v4592_v42 = vpack.c.bf16 (!%p4005_p11), %v3270_v17, %v3269_v9 }
 0xb8f   : > { %4408 = vmatmul.mubr.msk.f32.vlgmr.msra.gmra.mrb[18].mxu1 %vm801_vm1, %v2979_v50 }
 0xb90   : > { %4594 = vmatprep.subr.msk.bf16.mxu0 (!%p4005_p11), %vm5975_vm2, %v4592_v42  ;;  %v3266_v42 = vld [vmem:[#allocation16 + $0x68] sm:$0xff] (!%p4005_p11) }
 0xc62   : > { %v4409_v1 = vpop.f32.mrb[18].mxu1 }
 0xc63   : > { %v3088_v59 = vadd.f32 %v4409_v1, %v3988_v57  ;;  %v3082_v60 = vpop.f32.mrb[19].mxu1 }
 0xc64   : > { %v3083_v61 = vadd.f32 %v3988_v57, %v3082_v60  ;;  %v3285_v60 = vld [vmem:[#allocation16 + $0x100] sm:$0xff] (!%p4005_p11) }
 0xc65   : > { %v3094_v62 = vmul.f32 0.044715, %v3088_v59  ;;  %v3092_v20 = vmul.f32 0.5, %v3088_v59 }
 0xc66   : > { %v3093_v4 = vmul.f32 0.044715, %v3083_v61  ;;  %v3091_v18 = vmul.f32 0.5, %v3083_v61 }
 0xc67   : > { %v3096_v63 = vmul.f32 %v3094_v62, %v3088_v59 }
 0xc68   : > { %v3095_v3 = vmul.f32 %v3093_v4, %v3083_v61 }
 0xc69   : > { %v3098_v5 = vmul.f32 %v3096_v63, %v3088_v59  ;;  %v3271_v63 = vld [vmem:[#allocation16 + $0x90] sm:$0xff] (!%p4005_p11) }
 0xc6a   : > { %v3097_v0 = vmul.f32 %v3095_v3, %v3083_v61  ;;  %v3272_v3 = vld [vmem:[#allocation16 + $0x98] sm:$0xff] (!%p4005_p11) }
 0xc6b   : > { %v3100_v12 = vadd.f32 %v3098_v5, %v3088_v59  ;;  %v3254_v59 = vld [vmem:[#allocation16 + $0x8] sm:$0xff] (!%p4005_p11)  ;;  %v4598_v5 = vpack.c.bf16 (!%p4005_p11), %v3272_v3, %v3271_v63 }
 0xc6c   : > { %v3099_v7 = vadd.f32 %v3097_v0, %v3083_v61  ;;  %v3286_v61 = vld [vmem:[#allocation16 + $0x108] sm:$0xff] (!%p4005_p11)  ;;  %v4595_v62 = vpack.c.bf16 (!%p4005_p11), %v3254_v59, %v3253_v47  ;;  %v3287_v0 = vld [vmem:[#allocation16 + $0x110] sm:$0xff] (!%p4005_p11)  ;;  %v3265_v47 = vld [vmem:[#allocation16 + $0x60] sm:$0xff] (!%p4005_p11) }
 0xc6d   : > { %v3102_v8 = vmul.f32 0.7978846, %v3100_v12  ;;  %v4640_v4 = vpack.c.bf16 (!%p4005_p11), %v3286_v61, %v3285_v60  ;;  %v3288_v12 = vld [vmem:[#allocation16 + $0x118] sm:$0xff] (!%p4005_p11)  ;;  %v3283_v59 = vld [vmem:[#allocation16 + $0xf0] sm:$0xff] (!%p4005_p11) }
 0xc6e   : > { %v3101_v13 = vmul.f32 0.7978846, %v3099_v7  ;;  %v4646_v7 = vpack.c.bf16 (!%p4005_p11), %v3288_v12, %v3287_v0  ;;  %v3284_v60 = vld [vmem:[#allocation16 + $0xf8] sm:$0xff] (!%p4005_p11)  ;;  %v3299_v61 = vld [vmem:[#allocation16 + $0x170] sm:$0xff] (!%p4005_p11) }
 0xc6f   : > { %4927 = vtanh.f32 %v3102_v8  ;;  %4642 = vmatprep.subr.msk.bf16.mxu1 (!%p4005_p11), %vm5975_vm2, %v4640_v4  ;;  %v3255_v8 = vld [vmem:[#allocation16 + $0x10] sm:$0xff] (!%p4005_p11)  ;;  %v4634_v63 = vpack.c.bf16 (!%p4005_p11), %v3284_v60, %v3283_v59  ;;  %v3268_v0 = vld [vmem:[#allocation16 + $0x78] sm:$0xff] (!%p4005_p11) }
 0xc70   : > { %4929 = vtanh.f32 %v3101_v13  ;;  %4645 = vmatpush3.bf16.xpose.msk.msra.mxu1 (!%p4005_p11), %vm5975_vm2, %v4640_v4  ;;  %v3256_v13 = vld [vmem:[#allocation16 + $0x18] sm:$0xff] (!%p4005_p11)  ;;  %v4631_v4 = vpack.c.bf16 (!%p4005_p11), %v3266_v42, %v3265_v47 }
 0xc71   : > { %4648 = vmatprep.subr.msk.bf16.mxu1 (!%p4005_p11), %vm5975_vm2, %v4646_v7 }
 0xc78   : > { %4651 = vmatpush3.bf16.xpose.msk.msra.mxu1 (!%p4005_p11), %vm5975_vm2, %v4646_v7  ;;  %v3301_v7 = vld [vmem:[#allocation17] sm:$0x7] (!%p4005_p11) }
 0xc79   : > { %v4928_v31 = vpop.eup %4927  ;;  %v3314_v6 = vrot.slane (!%p4005_p11), %v3301_v7, %v6091_v58 }
 0xc7a   : > { %v4930_v14 = vpop.eup %4929  ;;  %v3106_v16 = vadd.f32 1.0, %v4928_v31  ;;  %v3273_v31 = vld [vmem:[#allocation16 + $0xa0] sm:$0xff] (!%p4005_p11) }
 0xc7b   : > { %v3105_v19 = vadd.f32 1.0, %v4930_v14  ;;  %v3274_v14 = vld [vmem:[#allocation16 + $0xa8] sm:$0xff] (!%p4005_p11) }
 0xc7c   : > { %v3108_v22 = vmul.f32 %v3106_v16, %v3092_v20  ;;  %v3289_v16 = vld [vmem:[#allocation16 + $0x120] sm:$0xff] (!%p4005_p11)  ;;  %v4604_v20 = vpack.c.bf16 (!%p4005_p11), %v3274_v14, %v3273_v31 }
 0xc7d   : > { %v3107_v21 = vmul.f32 %v3105_v19, %v3091_v18  ;;  %v3290_v18 = vld [vmem:[#allocation16 + $0x128] sm:$0xff] (!%p4005_p11)  ;;  %v4601_v19 = vpack.c.bf16 (!%p4005_p11), %v3256_v13, %v3255_v8  ;;  %v3306_v8 = vrot.slane (!%p4005_p11), %v3301_v7, %v6037_v29  ;;  %v3310_v13 = vrot.slane (!%p4005_p11), %v3301_v7, %v5989_v11 }
 0xc7f   : > { %4418 = vmatprep.mubr.msk.f32.mxu0 %vm3113_vm6, %v3107_v21  ;;  %v4652_v21 = vpack.c.bf16 (!%p4005_p11), %v3290_v18, %v3289_v16 }
 0xc80   : > { %4419 = vmatmul.mubr.msk.f32.vlgmr.msra.gmra.mrb[22].mxu0 %vm3113_vm6, %v3108_v22  ;;  %v3257_v22 = vld [vmem:[#allocation16 + $0x20] sm:$0xff] (!%p4005_p11) }
 0xc81   : > { %4597 = vmatpush3.bf16.xpose.msk.msra.mxu0 (!%p4005_p11), %vm5975_vm2, %v4595_v62  ;;  %4654 = vmatprep.subr.msk.bf16.mxu1 (!%p4005_p11), %vm5975_vm2, %v4652_v21  ;;  %v3300_v62 = vld [vmem:[#allocation16 + $0x178] sm:$0xff] (!%p4005_p11) }
 0xc82   : > { %4600 = vmatprep.subr.msk.bf16.mxu0 (!%p4005_p11), %vm5975_vm2, %v4598_v5  ;;  %4657 = vmatpush3.bf16.xpose.msk.msra.mxu1 (!%p4005_p11), %vm5975_vm2, %v4652_v21  ;;  %v4682_v3 = vpack.c.bf16 (!%p4005_p11), %v3300_v62, %v3299_v61  ;;  %v3267_v5 = vld [vmem:[#allocation16 + $0x70] sm:$0xff] (!%p4005_p11) }
 0xc83   : > { %v4637_v12 = vpack.c.bf16 (!%p4005_p11), %v3268_v0, %v3267_v5 }
 0xc89   : > { %4603 = vmatpush3.bf16.xpose.msk.msra.mxu0 (!%p4005_p11), %vm5975_vm2, %v4601_v19 }
 0xc8a   : > { %4606 = vmatprep.subr.msk.bf16.mxu0 (!%p4005_p11), %vm5975_vm2, %v4604_v20 }
 0xd53   : > { %v4420_v24 = vpop.f32.mrb[22].mxu0 }
 0xd54   : > { %v3204_v25 = vadd.f32 %v4420_v24, %v3112_v23  ;;  %v3198_v28 = vpop.f32.mrb[23].mxu0  ;;  %v3275_v24 = vld [vmem:[#allocation16 + $0xb0] sm:$0xff] (!%p4005_p11) }
 0xd55   : > { %v3199_v30 = vadd.f32 %v3198_v28, %v3112_v23  ;;  %v3258_v23 = vld [vmem:[#allocation16 + $0x28] sm:$0xff] (!%p4005_p11)  ;;  %v3291_v28 = vld [vmem:[#allocation16 + $0x130] sm:$0xff] (!%p4005_p11) }
 0xd56   : > { %v3208_v32 = vadd.f32 %v3204_v25, %v2979_v50  ;;  %v3276_v25 = vld [vmem:[#allocation16 + $0xb8] sm:$0xff] (!%p4005_p11) }
 0xd57   : > { %v3207_v33 = vadd.f32 %v3199_v30, %v2978_v45  ;;  %v3292_v30 = vld [vmem:[#allocation16 + $0x138] sm:$0xff] (!%p4005_p11) }
 0xd58   : > { %v3212_v35 = vsel %vm801_vm1, %v3208_v32, 0.0 }
 0xd59   : > { %3213 = vadd.xlane.f32.xlu0 %v3212_v35  ;;  %v3209_v37 = vsel %vm801_vm1, %v3207_v33, 0.0  ;;  %v4658_v35 = vpack.c.bf16 (!%p4005_p11), %v3292_v30, %v3291_v28 }
 0xd5a   : > { %3210 = vadd.xlane.f32.xlu1 %v3209_v37  ;;  %v3259_v37 = vld [vmem:[#allocation16 + $0x30] sm:$0xff] (!%p4005_p11) }
 0xd5b   : > { %4660 = vmatprep.subr.msk.bf16.mxu1 (!%p4005_p11), %vm5975_vm2, %v4658_v35 }
 0xd5c   : > { %4663 = vmatpush3.bf16.xpose.msk.msra.mxu1 (!%p4005_p11), %vm5975_vm2, %v4658_v35 }
 0xde6   : > { %v3214_v36 = vpop.xlane.xlu0 %3213 }
 0xde7   : > { %v3216_v34 = vmul.f32 0.03125, %v3214_v36  ;;  %v3211_v38 = vpop.xlane.xlu1 %3210  ;;  %v3260_v36 = vld [vmem:[#allocation16 + $0x38] sm:$0xff] (!%p4005_p11) }
 0xde8   : > { %v3215_v39 = vmul.f32 0.03125, %v3211_v38  ;;  %v3278_v38 = vld [vmem:[#allocation16 + $0xc8] sm:$0xff] (!%p4005_p11) }
 0xde9   : > { %v3218_v26 = vsub.f32 %v3208_v32, %v3216_v34  ;;  %v4607_v32 = vpack.c.bf16 (!%p4005_p11), %v3258_v23, %v3257_v22  ;;  %v3277_v34 = vld [vmem:[#allocation16 + $0xc0] sm:$0xff] (!%p4005_p11) }
 0xdea   : > { %v3217_v10 = vsub.f32 %v3207_v33, %v3215_v39  ;;  %v4610_v33 = vpack.c.bf16 (!%p4005_p11), %v3276_v25, %v3275_v24  ;;  %v3293_v39 = vld [vmem:[#allocation16 + $0x140] sm:$0xff] (!%p4005_p11) }
 0xdeb   : > { %v3220_v40 = vmul.f32 %v3218_v26, %v3218_v26  ;;  %4609 = vmatpush3.bf16.xpose.msk.msra.mxu0 (!%p4005_p11), %vm5975_vm2, %v4607_v32 }
 0xdec   : > { %v3219_v41 = vmul.f32 %v3217_v10, %v3217_v10  ;;  %4612 = vmatprep.subr.msk.bf16.mxu0 (!%p4005_p11), %vm5975_vm2, %v4610_v33 }
 0xded   : > { %v3224_v43 = vsel %vm801_vm1, %v3220_v40, 0.0  ;;  %v4616_v40 = vpack.c.bf16 (!%p4005_p11), %v3278_v38, %v3277_v34 }
 0xdee   : > { %3225 = vadd.xlane.f32.xlu0 %v3224_v43  ;;  %v3221_v44 = vsel %vm801_vm1, %v3219_v41, 0.0  ;;  %v3261_v43 = vld [vmem:[#allocation16 + $0x40] sm:$0xff] (!%p4005_p11) }
 0xdef   : > { %3222 = vadd.xlane.f32.xlu1 %v3221_v44  ;;  %v3262_v44 = vld [vmem:[#allocation16 + $0x48] sm:$0xff] (!%p4005_p11) }
 0xe7b   : > { %v3226_v46 = vpop.xlane.xlu0 %3225 }
 0xe7c   : > { %v3228_v27 = vmul.f32 0.03125, %v3226_v46  ;;  %v3223_v48 = vpop.xlane.xlu1 %3222  ;;  %v3279_v46 = vld [vmem:[#allocation16 + $0xd0] sm:$0xff] (!%p4005_p11) }
 0xe7d   : > { %v3227_v2 = vmul.f32 0.03125, %v3223_v48  ;;  %v3295_v48 = vld [vmem:[#allocation16 + $0x150] sm:$0xff] (!%p4005_p11) }
 0xe7e   : > { %v3230_v15 = vadd.f32 1e-05, %v3228_v27  ;;  %v3280_v27 = vld [vmem:[#allocation16 + $0xd8] sm:$0xff] (!%p4005_p11) }
 0xe7f   : > { %v3229_v45 = vadd.f32 1e-05, %v3227_v2  ;;  %v3296_v2 = vld [vmem:[#allocation16 + $0x158] sm:$0xff] (!%p4005_p11) }
 0xe80   : > { %4931 = vrsqrt.f32 %v3230_v15  ;;  %v4619_v15 = vpack.c.bf16 (!%p4005_p11), %v3262_v44, %v3261_v43 }
 0xe81   : > { %4933 = vrsqrt.f32 %v3229_v45  ;;  %v4622_v45 = vpack.c.bf16 (!%p4005_p11), %v3280_v27, %v3279_v46 }
 0xe8a   : > { %v4932_v50 = vpop.eup %4931 }
 0xe8b   : > { %v4934_v52 = vpop.eup %4933  ;;  %v3234_v53 = vmul.f32 %v4932_v50, %v3218_v26  ;;  %v3294_v26 = vld [vmem:[#allocation16 + $0x148] sm:$0xff] (!%p4005_p11)  ;;  %v3263_v50 = vld [vmem:[#allocation16 + $0x50] sm:$0xff] (!%p4005_p11) }
 0xe8c   : > { %v3233_v55 = vmul.f32 %v4934_v52, %v3217_v10  ;;  %3252 = sbr.rel (%p4005_p11) target bundleno = 3985 (0xf91), region = 124  ;;  %v4613_v10 = vpack.c.bf16 (!%p4005_p11), %v3260_v36, %v3259_v37  ;;  %v4664_v41 = vpack.c.bf16 (!%p4005_p11), %v3294_v26, %v3293_v39  ;;  %v3264_v52 = vld [vmem:[#allocation16 + $0x58] sm:$0xff] (!%p4005_p11) }
 0xe8d   : > { %v3240_v54 = vmul.f32 %v3238_v49, %v3234_v53  ;;  %v3282_v53 = vld [vmem:[#allocation16 + $0xe8] sm:$0xff] (!%p4005_p11) }
 0xe8e   : > { %v3239_v56 = vmul.f32 %v3238_v49, %v3233_v55  ;;  %4615 = vmatpush3.bf16.xpose.msk.msra.mxu0 (!%p4005_p11), %vm5975_vm2, %v4613_v10  ;;  %4666 = vmatprep.subr.msk.bf16.mxu1 (!%p4005_p11), %vm5975_vm2, %v4664_v41  ;;  %v4670_v49 = vpack.c.bf16 (!%p4005_p11), %v3296_v2, %v3295_v48  ;;  %v3297_v55 = vld [vmem:[#allocation16 + $0x160] sm:$0xff] (!%p4005_p11) }
 0xe8f   : > { %v6374_v57 = vadd.f32 %v3244_v51, %v3240_v54  ;;  %4618 = vmatprep.subr.msk.bf16.mxu0 (!%p4005_p11), %vm5975_vm2, %v4616_v40  ;;  %4669 = vmatpush3.bf16.xpose.msk.msra.mxu1 (!%p4005_p11), %vm5975_vm2, %v4664_v41  ;;  %v3298_v54 = vld [vmem:[#allocation16 + $0x168] sm:$0xff] (!%p4005_p11) }
 0xe90   : > { %v6376_v1 = vadd.f32 %v3244_v51, %v3239_v56  ;;  %4672 = vmatprep.subr.msk.bf16.mxu1 (!%p4005_p11), %vm5975_vm2, %v4670_v49  ;;  %v3281_v51 = vld [vmem:[#allocation16 + $0xe0] sm:$0xff] (!%p4005_p11)  ;;  %v4625_v56 = vpack.c.bf16 (!%p4005_p11), %v3264_v52, %v3263_v50  ;;  %v4676_v17 = vpack.c.bf16 (!%p4005_p11), %v3298_v54, %v3297_v55 }
 0xe91   : > { %3248 = vst.msk [vmem:[#allocation2 + $0x8] sm:$0xff] %vm801_vm1, %v6374_v57  ;;  %v4628_v9 = vpack.c.bf16 (!%p4005_p11), %v3282_v53, %v3281_v51 }
 0xe92   : > { %3247 = vst.msk [vmem:[#allocation2] sm:$0xff] %vm801_vm1, %v6376_v1  ;;  %4196 = vmatprep.mubr.msk.f32.mxu0 (!%p4005_p11), %vm801_vm1, %v6376_v1  ;;  %4453 = vmatprep.mubr.msk.f32.mxu1 (!%p4005_p11), %vm801_vm1, %v6376_v1 }
 0xe96   : > { %4621 = vmatpush3.bf16.xpose.msk.msra.mxu0 %vm5975_vm2, %v4619_v15 }
 0xe97   : > { %4624 = vmatprep.subr.msk.bf16.mxu0 %vm5975_vm2, %v4622_v45  ;;  %4675 = vmatpush3.bf16.xpose.msk.msra.mxu1 %vm5975_vm2, %v4670_v49 }
 0xe98   : > { %4678 = vmatprep.subr.msk.bf16.mxu1 %vm5975_vm2, %v4676_v17 }
 0xe9e   : > { %4627 = vmatpush3.bf16.xpose.msk.msra.mxu0 %vm5975_vm2, %v4625_v56 }
 0xe9f   : > { %4630 = vmatprep.subr.msk.bf16.mxu0 %vm5975_vm2, %v4628_v9  ;;  %4681 = vmatpush3.bf16.xpose.msk.msra.mxu1 %vm5975_vm2, %v4676_v17 }
 0xea0   : > { %4684 = vmatprep.subr.msk.bf16.mxu1 %vm5975_vm2, %v4682_v3 }
 0xea6   : > { %4633 = vmatpush3.bf16.xpose.msk.msra.mxu0 %vm5975_vm2, %v4631_v4 }
 0xea7   : > { %4636 = vmatprep.subr.msk.bf16.mxu0 %vm5975_vm2, %v4634_v63  ;;  %4687 = vmatpush3.bf16.xpose.msk.msra.mxu1 %vm5975_vm2, %v4682_v3 }
 0xeae   : > { %4639 = vmatpush3.bf16.xpose.msk.msra.mxu0 %vm5975_vm2, %v4637_v12  ;;  %4454 = vmatmul.mubr.msk.f32.vlgmr.msra.gmra.mrb[0].mxu1 %vm801_vm1, %v6374_v57 }
 0xeb5   : > { %4197 = vmatmul.mubr.msk.f32.vlgmr.msra.gmra.mrb[0].mxu0 %vm801_vm1, %v6376_v1 }
 0xeb6   : > { %4198 = vmatprep.mubr.msk.f32.mxu0 %vm801_vm1, %v6374_v57 }
 0xeb9   : > { %4199 = vmatmul.mubr.msk.f32.gmra.mrb[2].mxu0 %vm801_vm1, %v6374_v57 }
 0xf81   : > { %v4455_v1 = vpop.f32.mrb[0].mxu1 }
 0xf82   : > { %v3617_v19 = vadd.f32 %v4455_v1, %v3314_v6  ;;  %v3611_v20 = vpop.f32.mrb[1].mxu1 }
 0xf83   : > { %v3612_v21 = vadd.f32 %v3611_v20, %v3314_v6 }
 0xf84   : > { %3625 = vst [vmem:[#allocation19 + $0x28] sm:$0xff] %v3617_v19 }
 0xf85   : > { %3622 = vst [vmem:[#allocation19 + $0x10] sm:$0xff] %v3612_v21 }
 0xf88   : > { %v3534_v31 = vpop.f32.mrb[0].mxu0 }
 0xf89   : > { %v3535_v14 = vadd.f32 %v3534_v31, %v3306_v8  ;;  %v3536_v16 = vpop.f32.mrb[1].mxu0 }
 0xf8a   : > { %v3537_v18 = vadd.f32 %v3536_v16, %v3310_v13 }
 0xf8b   : > { %3620 = vst [vmem:[#allocation19] sm:$0xff] %v3535_v14 }
 0xf8c   : > { %3621 = vst [vmem:[#allocation19 + $0x8] sm:$0xff] %v3537_v18  ;;  %v3540_v22 = vpop.f32.mrb[2].mxu0 }
 0xf8d   : > { %v3541_v57 = vadd.f32 %v3540_v22, %v3306_v8  ;;  %v3542_v23 = vpop.f32.mrb[3].mxu0 }
 0xf8e   : > { %v3543_v29 = vadd.f32 %v3542_v23, %v3310_v13 }
 0xf8f   : > { %3623 = vst [vmem:[#allocation19 + $0x18] sm:$0xff] %v3541_v57 }
 0xf90   : > { %3624 = vst [vmem:[#allocation19 + $0x20] sm:$0xff] %v3543_v29 }
 0xf91 PF: > { %s6594_s15 = sld [smem:[#allocation29_spill]]  ;;  %s5417_s22 = smov [#allocation19]  }
 0xf92   : > { %s3636_s0 = sshll.u32 %s5417_s22, 4  ;;  %s3637_s0 = int_to_ptr.vmem [resolvable:$true] %s3636_s0 }
 0xf93   : > { %s5287_s14 = scalar_lea.vmem %s3637_s0, 768  ;;  %p5294_p7 = scmp.lt.s32.totalorder %s3637_s0, %s3637_s0 }
 0xf94   : > { %p5288_p3 = scmp.ne.s32.totalorder %s3637_s0, %s5287_s14  ;;  %p5295_p10 = scmp.lt.s32.totalorder %s5287_s14, %s5287_s14 }
 0xf96   : > { %p5296_p6 = por %p5295_p10, %p5294_p7 }
 0xf97   : > { %p4780_p2 = scmp.eq.s32.totalorder %s6594_s15, 1 }
 0xf99   : > { %p5289_p9 = pnand %p5288_p3, %p4780_p2 }
 0xf9b   : > { %p5290_p1 = pneg %p5289_p9 }
 0xf9d   : > { %p5297_p13 = pnand %p5296_p6, %p5290_p1 }
 0xf9f   : > { %5300 = shalt.err (!%p5297_p13)
}
 0xfa0   : > { %s6595_s27 = sld [smem:[#allocation38_spill]] }
 0xfa6   : > { %s5301_s21 = scalar_lea.hbm %s6595_s27, 768 }
 0xfa7   : > { %p5302_p8 = scmp.ne.s32.totalorder %s6595_s27, %s5301_s21  ;;  %p5307_p0 = scmp.lt.u32.totalorder %s5301_s21, %s6595_s27 }
 0xfa9   : > { %p5303_p5 = pnand %p5302_p8, %p4780_p2 }
 0xfab   : > { %p5304_p4 = pneg %p5303_p5 }
 0xfad   : > { %p5309_p12 = pnand %p5307_p0, %p5304_p4 }
 0xfaf   : > { %5312 = shalt.err (!%p5309_p12)
}
 0xfb0   : > { %s5418_s12 = smov 384   ;;  %s5419_s3 = smov 24  }
 0xfb1   : > { %4730 = dma.vmem_to_hbm [thread:$0]  (%p4780_p2), %s3637_s0, 768, %s6595_s27, [#allocation5], %s5418_s12, %s5418_s12, %s5419_s3  }
 0xfb2   : > { %5358 = dma.done.wait (%p4780_p2), [#allocation5], 768  }
 0xfb3   : > { %5360 = vsyncadd (%p4780_p2), [#allocation5], 4294966528 }
 0xfb4 PF: > { %s6596_s13 = sld [smem:[#allocation28_spill]]  ;;  %s6597_s21 = sld [smem:[#allocation26_spill]] }
 0xfb5   : > { %s6598_s29 = sld [smem:[#allocation33_spill]]  ;;  %s6599_s28 = sld [smem:[#allocation32_spill]] }
 0xfb6   : > { %s6600_s22 = smov %s5371_s23  ;;  %s6602_s24 = smov %s5379_s25 }
 0xfba   : > { %s26_s26 = sadd.s32 1, %s6596_s13  }
 0xfbb   : > { %p23_p11 = scmp.ge.s32.totalorder %s26_s26, 4   ;;  %s6601_s23 = smov %s6598_s29 }
 0xfbc   : > { %s6603_s25 = smov %s6599_s28 }
 0xfbd   :  { %25 = sbr.rel (!%p23_p11) target bundleno = 12 (0xc), region = 207 }
 0xfc4   :  { %3652 = vsyncpa [#allocation4], 1 }
 0xfc5   :  { %3654 = vsyncpa [#allocation4 + $0x1], 1 }
 0xfc6   :  { %3655 = vsyncpa [#allocation7], 1 }
 0xfc7   :  { %3656 = vsyncpa [#allocation18], 1 }
 0xfc8   :  { %3657 = vsyncpa [#allocation5], 1 }
 0xfc9   :  { %3659 = vsyncpa [#allocation5 + $0x1], 1 }

</bundles_post_ra>
